<compile_context>
chip_gen: v5e
topology: v5e:2x2
jax: 0.10.0
libtpu: 0.0.40
codegen_flags: <defaults>
</compile_context>

<pallas_src>
import jax
import jax.numpy as jnp
from jax import lax
from jax.experimental import pallas as pl
from jax.experimental.pallas import tpu as pltpu


# --------------------------------- fused kernel ------------------------------------


def _make_kablock_kernel(C, K, H, W, H2, W2, temperature, res_scale):
    """All sizes are compile-time constants closed over by the kernel body."""
    p = K // 2
    Hp, Wp = H + 2 * p, W + 2 * p
    HWw = H * Wp                         # width-Wp working layout of one sample
    Npx = (Hp + 1) * Wp                  # padded-x length (+1 zero tail row)
    Hq, Wq = H2 + 2 * (K - 1), W2 + 2 * (K - 1)
    Lk = H2 * Wq                         # k-side contraction length
    Lb = (H2 + K - 1) * Wq + (K - 1)     # length of the w_kam * q_pad correlation
    KK = K * K
    eps = 1e-12
    dn_t = (((1,), (1,)), ((), ()))      # contract the last dim of both operands

    def kernel(mask_ref, patch_ref, xpad_ref, wqk_ref, wkam_ref, wout_ref,
               b_ref, o_ref, qk_scr, akp_scr, gat_scr, zpad_scr):
        # --- qk: 3x3 / stride-3 conv as ONE matmul.  The patch matrix is laid out
        #     directly on the (K-1)-zero-padded q grid, so q needs no in-kernel
        #     re-padding and k is a constant-offset lane slice of the same result.
        qk_scr[...] = jnp.dot(wqk_ref[...], patch_ref[0],
                              preferred_element_type=jnp.float32)
        q_pad = qk_scr[0:C, :]                                  # (C, Nq)
        k_off = (K - 1) * Wq + (K - 1)
        k_work = qk_scr[C:2 * C, k_off:k_off + Lk]              # (C, Lk)

        # pre-normalize scale (bilinear -> folded in; the later per-output-channel
        # L2 norm cancels it exactly, kept only for numerical parity).
        qn = jnp.maximum(jnp.sqrt(jnp.sum(q_pad * q_pad)), eps)
        kn = jnp.maximum(jnp.sqrt(jnp.sum(k_work * k_work)), eps)
        scale = 1.0 / (qn * kn)

        # --- wq[o, m] = sum_{ki,kj,ci} w_kam[o,ci,ki,kj] * q_pad[ci, m + ki*Wq + kj]
        wq = None
        for ki in range(K):
            for kj in range(K):
                t = ki * K + kj
                tap = wkam_ref[:, t * C:(t + 1) * C]            # (C_out, C_in)
                slab = qk_scr[0:C, ki * Wq + kj:ki * Wq + kj + Lb]
                d = jnp.dot(tap, slab, preferred_element_type=jnp.float32)
                wq = d if wq is None else wq + d
        qk_scr[0:C, 0:Lb] = wq * scale                          # q rows reused

        # --- akp[i,j][o, co] = sum_m wq[o, m + i*Wq + j] * k[co, m]
        #     (== conv2d(xtx(q, k), w_kam) + permute of the reference), written
        #     straight into the (C, K*K*C) "folded kernel" layout.
        for i in range(K):
            for j in range(K):
                sft = i * Wq + j
                a = lax.dot_general(qk_scr[0:C, sft:sft + Lk], k_work, dn_t,
                                    preferred_element_type=jnp.float32)
                akp_scr[:, (i * K + j) * C:(i * K + j + 1) * C] = a

        # --- L2-normalize over (c_in, ki, kj) per output channel; mix with weight.
        akp = akp_scr[...]                                      # (C, KK*C)
        nrm = jnp.sqrt(jnp.sum(akp * akp, axis=1, keepdims=True))
        dynk = wkam_ref[...] + akp * (temperature / jnp.maximum(nrm, eps))

        # --- sample-wise dynamic KxK conv + ReLU: gather the K*K shifted slabs of
        #     padded x into (K*K*C, H*Wp) and do ONE folded matmul.
        for s in range(KK):
            ki, kj = divmod(s, K)
            off = ki * Wp + kj
            gat_scr[s * C:(s + 1) * C, :] = xpad_ref[0, :, off:off + HWw]
        z = jnp.dot(dynk, gat_scr[...], preferred_element_type=jnp.float32)
        z = jnp.maximum(z, 0.0) * mask_ref[...]     # ReLU; zero row-wrap columns
        # (the body's second ReLU after KAM is a no-op on already-ReLU'd z)
        zpad_scr[...] = jnp.zeros((C, Npx), jnp.float32)
        zpad_scr[:, p * Wp + p:p * Wp + p + HWw] = z            # re-pad z in VMEM

        # --- final KxK conv (+bias), * res_scale, + residual -----------------------
        for s in range(KK):
            ki, kj = divmod(s, K)
            off = ki * Wp + kj
            gat_scr[s * C:(s + 1) * C, :] = zpad_scr[:, off:off + HWw]
        y = jnp.dot(wout_ref[...], gat_scr[...],
                    preferred_element_type=jnp.float32) + b_ref[...]
        x_res = xpad_ref[0, :, p * Wp + p:p * Wp + p + HWw]
        o_ref[0] = y * res_scale + x_res

    return kernel


# ------------------------------------ wrapper ---------------------------------------


def kablock_forward(x, params, K, res_scale=1.0):
    B, C, H, W = x.shape
    assert K % 2 == 1
    p = K // 2
    Hp, Wp = H + 2 * p, W + 2 * p
    Npx = (Hp + 1) * Wp
    HWw = H * Wp
    H2 = (H - 3) // 3 + 1
    W2 = (W - 3) // 3 + 1
    Hq, Wq = H2 + 2 * (K - 1), W2 + 2 * (K - 1)
    Nq = (Hq + 1) * Wq
    KK = K * K

    x = x.astype(jnp.float32)
    w_qk = params["w_qk"].astype(jnp.float32)          # (2C, C, 3, 3)
    w_kam = params["w_kam"].astype(jnp.float32)        # (C, C, K, K)
    w_out = params["w_out"].astype(jnp.float32)        # (C, C, K, K)
    b_out = params["b_out"].astype(jnp.float32)        # (C,)
    temperature = float(params["temperature"])

    # stride-3 3x3 patches of x, laid out directly on the (K-1)-zero-padded q grid
    # (plus one zero tail row so in-kernel shifted slab reads stay in bounds).
    patches = (x[:, :, :H2 * 3, :W2 * 3]
               .reshape(B, C, H2, 3, W2, 3)
               .transpose(0, 1, 3, 5, 2, 4)            # (B, C, pi, pj, h2, w2)
               .reshape(B, C * 9, H2, W2))
    patches = jnp.pad(patches, ((0, 0), (0, 0), (K - 1, K), (K - 1, K - 1)))
    patches = patches.reshape(B, C * 9, Nq)

    # x zero-padded by K//2 (+ one zero tail row), row-major flattened.
    x_pad = jnp.pad(x, ((0, 0), (0, 0), (p, p + 1), (p, p))).reshape(B, C, Npx)

    # static weights, pre-flattened with K*K folded into the contraction dim.
    w_qk2d = w_qk.reshape(2 * C, C * 9)
    w_kam_f = w_kam.transpose(0, 2, 3, 1).reshape(C, KK * C)   # [o, (ki*K+kj)*C + i]
    w_out_f = w_out.transpose(0, 2, 3, 1).reshape(C, KK * C)
    b_col = b_out.reshape(C, 1)

    # valid-column mask for the width-Wp working layout (zeros the row-wrap columns).
    mask = (jnp.arange(HWw) % Wp < W).astype(jnp.float32).reshape(1, HWw)

    kernel = _make_kablock_kernel(C, K, H, W, H2, W2, temperature, float(res_scale))

    out_flat = pl.pallas_call(
        kernel,
        out_shape=jax.ShapeDtypeStruct((B, C, HWw), jnp.float32),
        grid=(B,),
        in_specs=[
            pl.BlockSpec((1, HWw), lambda b: (0, 0)),            # mask
            pl.BlockSpec((1, C * 9, Nq), lambda b: (b, 0, 0)),   # patches
            pl.BlockSpec((1, C, Npx), lambda b: (b, 0, 0)),      # padded x
            pl.BlockSpec((2 * C, C * 9), lambda b: (0, 0)),      # w_qk
            pl.BlockSpec((C, KK * C), lambda b: (0, 0)),         # w_kam (folded)
            pl.BlockSpec((C, KK * C), lambda b: (0, 0)),         # w_out (folded)
            pl.BlockSpec((C, 1), lambda b: (0, 0)),              # bias
        ],
        out_specs=pl.BlockSpec((1, C, HWw), lambda b: (b, 0, 0)),
        scratch_shapes=[
            pltpu.VMEM((2 * C, Nq), jnp.float32),                # qk result
            pltpu.VMEM((C, KK * C), jnp.float32),                # akp / dynk layout
            pltpu.VMEM((KK * C, HWw), jnp.float32),              # shift-gather (reused)
            pltpu.VMEM((C, Npx), jnp.float32),                   # re-padded z
        ],
        compiler_params=pltpu.CompilerParams(
            dimension_semantics=("parallel",)),
    )(mask, patches, x_pad, w_qk2d, w_kam_f, w_out_f, b_col)

    # drop the 2p row-wrap columns of the working layout -> (B, C, H, W)
    return out_flat.reshape(B, C, H, Wp)[:, :, :, :W]


# -------------------------- pure-JAX reference (for checking) -----------------------


def kablock_reference(x, params, K, res_scale=1.0):
    B, C, H, W = x.shape
    dn = ('NCHW', 'OIHW', 'NCHW')
    prec = lax.Precision.HIGHEST
    qk = lax.conv_general_dilated(x, params["w_qk"], (3, 3), 'VALID',
                                  dimension_numbers=dn, precision=prec)
    q, k = qk[:, :C], qk[:, C:]
    qf = q.reshape(B, -1)
    kf = k.reshape(B, -1)
    q = (qf / jnp.maximum(jnp.linalg.norm(qf, axis=-1, keepdims=True), 1e-12)).reshape(q.shape)
    k = (kf / jnp.maximum(jnp.linalg.norm(kf, axis=-1, keepdims=True), 1e-12)).reshape(k.shape)

    def xtx_single(qb, kb):
        o = lax.conv_general_dilated(qb[:, None], kb[:, None], (1, 1),
                                     [(K - 1, K - 1), (K - 1, K - 1)],
                                     dimension_numbers=dn, precision=prec)
        return o.transpose(1, 0, 2, 3)            # (co, cq, 2K-1, 2K-1)

    attn = jax.vmap(xtx_single)(q, k)             # (B, C, C, 2K-1, 2K-1)
    attn = attn.reshape(B * C, C, 2 * K - 1, 2 * K - 1)
    ak = lax.conv_general_dilated(attn, params["w_kam"], (1, 1), 'VALID',
                                  dimension_numbers=dn, precision=prec)
    ak = ak.reshape(B, C, C, K, K).transpose(0, 2, 1, 3, 4)
    akf = ak.reshape(B, C, -1)
    ak = (akf / jnp.maximum(jnp.linalg.norm(akf, axis=-1, keepdims=True), 1e-12)).reshape(ak.shape)
    dynk = params["w_kam"][None] + ak * params["temperature"]

    def dynconv(xb, wb):
        return lax.conv_general_dilated(xb[None], wb, (1, 1),
                                        [(K // 2, K // 2)] * 2,
                                        dimension_numbers=dn, precision=prec)[0]

    out = jnp.maximum(jax.vmap(dynconv)(x, dynk), 0.0)
    y = lax.conv_general_dilated(out, params["w_out"], (1, 1),
                                 [(K // 2, K // 2)] * 2, dimension_numbers=dn,
                                 precision=prec)
    y = y + params["b_out"].reshape(1, C, 1, 1)
    return y * res_scale + x


# -------------------------------------- main ----------------------------------------


if __name__ == "__main__":
    B, C, H, W = 2, 8, 16, 16
    K = 3
    res_scale = 1.0

    key = jax.random.PRNGKey(0)
    k1, k2, k3, k4, k5 = jax.random.split(key, 5)
    params = {
        # Conv2d(C, 2C, 3, stride=3, bias=False)
        "w_qk": jax.random.normal(k1, (2 * C, C, 3, 3), jnp.float32) * (2.0 / (C * 9)) ** 0.5,
        # KAM weight: kaiming_normal * 0.1
        "w_kam": jax.random.normal(k2, (C, C, K, K), jnp.float32) * (2.0 / (C * K * K)) ** 0.5 * 0.1,
        # TODO(synk): module __init__ sets temperature=0 (zeroing the dynamic term);
        # use a nonzero deterministic value so the full path is exercised.
        "temperature": 0.5,
        # final conv(C, C, K, bias=True)
        "w_out": jax.random.normal(k3, (C, C, K, K), jnp.float32) * (1.0 / (C * K * K)) ** 0.5,
        "b_out": jax.random.normal(k4, (C,), jnp.float32) * 0.01,
        # NOTE: KAM's `bias` Parameter (C, C) is never used in forward -> omitted.
    }
    x = jax.random.normal(k5, (B, C, H, W), jnp.float32)

    out = kablock_forward(x, params, K=K, res_scale=res_scale)
    out = jax.block_until_ready(out)

    ref = jax.block_until_ready(kablock_reference(x, params, K=K, res_scale=res_scale))
    assert out.shape == (B, C, H, W)
    max_err = float(jnp.max(jnp.abs(out - ref)))
    assert max_err < 2e-2, f"mismatch vs reference: max abs err = {max_err}"

    print("KERNEL_OK")
</pallas_src>

<mosaic_0001>
module attributes {stable_mosaic.version = 11 : i64} {
  func.func @kernel(%arg0: i32, %arg1: memref<1x288xf32, #tpu.memory_space<vmem>>, %arg2: memref<1x72x90xf32, #tpu.memory_space<vmem>>, %arg3: memref<1x8x342xf32, #tpu.memory_space<vmem>>, %arg4: memref<16x72xf32, #tpu.memory_space<vmem>>, %arg5: memref<8x72xf32, #tpu.memory_space<vmem>>, %arg6: memref<8x72xf32, #tpu.memory_space<vmem>>, %arg7: memref<8x1xf32, #tpu.memory_space<vmem>>, %arg8: memref<1x8x288xf32, #tpu.memory_space<vmem>>, %arg9: memref<16x90xf32, #tpu.memory_space<vmem>>, %arg10: memref<8x72xf32, #tpu.memory_space<vmem>>, %arg11: memref<72x288xf32, #tpu.memory_space<vmem>>, %arg12: memref<8x342xf32, #tpu.memory_space<vmem>>) attributes {dimension_semantics = [#tpu.dimension_semantics<parallel>], iteration_bounds = array<i64: 2>, scalar_prefetch = 0 : i64, scratch_operands = 4 : i64, tpu.core_type = #tpu.core_type<tc>, window_params = [{pipeline_mode = #tpu.pipeline_mode<synchronous>, transform_indices = @transform_0, window_bounds = array<i64: 1, 288>}, {transform_indices = @transform_1, window_bounds = array<i64: 1, 72, 90>}, {transform_indices = @transform_2, window_bounds = array<i64: 1, 8, 342>}, {pipeline_mode = #tpu.pipeline_mode<synchronous>, transform_indices = @transform_3, window_bounds = array<i64: 16, 72>}, {pipeline_mode = #tpu.pipeline_mode<synchronous>, transform_indices = @transform_4, window_bounds = array<i64: 8, 72>}, {pipeline_mode = #tpu.pipeline_mode<synchronous>, transform_indices = @transform_5, window_bounds = array<i64: 8, 72>}, {pipeline_mode = #tpu.pipeline_mode<synchronous>, transform_indices = @transform_6, window_bounds = array<i64: 8, 1>}, {transform_indices = @transform_7, window_bounds = array<i64: 1, 8, 288>}]} {
    %c0 = arith.constant 0 : index
    %c0_0 = arith.constant 0 : index
    %0 = vector.load %arg4[%c0, %c0_0] : memref<16x72xf32, #tpu.memory_space<vmem>>, vector<16x72xf32>
    %c0_1 = arith.constant 0 : index
    %c0_2 = arith.constant 0 : index
    %c0_3 = arith.constant 0 : index
    %1 = vector.load %arg2[%c0_1, %c0_2, %c0_3] : memref<1x72x90xf32, #tpu.memory_space<vmem>>, vector<1x72x90xf32>
    %2 = vector.shape_cast %1 : vector<1x72x90xf32> to vector<72x90xf32>
    %cst = arith.constant dense<0.000000e+00> : vector<16x90xf32>
    %3 = tpu.matmul %0, %2, %cst {dimension_numbers = #tpu.dot_dimension_numbers<[1], [0], [0], [1], [0, 0, 1, 1], [], []>} : vector<16x72xf32>, vector<72x90xf32>, vector<16x90xf32> -> vector<16x90xf32>
    %c0_4 = arith.constant 0 : index
    %c0_5 = arith.constant 0 : index
    %4 = vector.load %arg9[%c0_4, %c0_5] : memref<16x90xf32, #tpu.memory_space<vmem>>, vector<16x90xf32>
    tpu.vector_store %arg9[%c0_4, %c0_5], %3 {strides = array<i32>} : memref<16x90xf32, #tpu.memory_space<vmem>>, vector<16x90xf32>,
    %c0_6 = arith.constant 0 : index
    %c0_7 = arith.constant 0 : index
    %5 = vector.load %arg9[%c0_6, %c0_7] : memref<16x90xf32, #tpu.memory_space<vmem>>, vector<8x90xf32>
    %c8 = arith.constant 8 : index
    %c20 = arith.constant 20 : index
    %6 = vector.load %arg9[%c8, %c20] : memref<16x90xf32, #tpu.memory_space<vmem>>, vector<8x45xf32>
    %7 = arith.mulf %5, %5 : vector<8x90xf32>
    %8 = vector.shape_cast %7 : vector<8x90xf32> to vector<1x8x90xf32>
    %cst_8 = arith.constant dense<0.000000e+00> : vector<1xf32>
    %9 = vector.multi_reduction <add>, %8, %cst_8 [1, 2] : vector<1x8x90xf32> to vector<1xf32>
    %10 = vector.shape_cast %9 : vector<1xf32> to vector<1x1x1xf32>
    %11 = vector.extract %10[0, 0, 0] : f32 from vector<1x1x1xf32>
    %12 = math.sqrt %11 : f32
    %cst_9 = arith.constant 9.99999996E-13 : f32
    %13 = arith.maximumf %12, %cst_9 : f32
    %14 = arith.mulf %6, %6 : vector<8x45xf32>
    %15 = vector.shape_cast %14 : vector<8x45xf32> to vector<1x8x45xf32>
    %cst_10 = arith.constant dense<0.000000e+00> : vector<1xf32>
    %16 = vector.multi_reduction <add>, %15, %cst_10 [1, 2] : vector<1x8x45xf32> to vector<1xf32>
    %17 = vector.shape_cast %16 : vector<1xf32> to vector<1x1x1xf32>
    %18 = vector.extract %17[0, 0, 0] : f32 from vector<1x1x1xf32>
    %19 = math.sqrt %18 : f32
    %cst_11 = arith.constant 9.99999996E-13 : f32
    %20 = arith.maximumf %19, %cst_11 : f32
    %21 = arith.mulf %13, %20 : f32
    %cst_12 = arith.constant 1.000000e+00 : f32
    %22 = arith.divf %cst_12, %21 : f32
    %c0_13 = arith.constant 0 : index
    %c0_14 = arith.constant 0 : index
    %23 = vector.load %arg5[%c0_13, %c0_14] : memref<8x72xf32, #tpu.memory_space<vmem>>, vector<8x8xf32>
    %c0_15 = arith.constant 0 : index
    %c0_16 = arith.constant 0 : index
    %24 = vector.load %arg9[%c0_15, %c0_16] : memref<16x90xf32, #tpu.memory_space<vmem>>, vector<8x65xf32>
    %cst_17 = arith.constant dense<0.000000e+00> : vector<8x65xf32>
    %25 = tpu.matmul %23, %24, %cst_17 {dimension_numbers = #tpu.dot_dimension_numbers<[1], [0], [0], [1], [0, 0, 1, 1], [], []>} : vector<8x8xf32>, vector<8x65xf32>, vector<8x65xf32> -> vector<8x65xf32>
    %c0_18 = arith.constant 0 : index
    %c8_19 = arith.constant 8 : index
    %26 = vector.load %arg5[%c0_18, %c8_19] : memref<8x72xf32, #tpu.memory_space<vmem>>, vector<8x8xf32>
    %c0_20 = arith.constant 0 : index
    %c1 = arith.constant 1 : index
    %27 = vector.load %arg9[%c0_20, %c1] : memref<16x90xf32, #tpu.memory_space<vmem>>, vector<8x65xf32>
    %cst_21 = arith.constant dense<0.000000e+00> : vector<8x65xf32>
    %28 = tpu.matmul %26, %27, %cst_21 {dimension_numbers = #tpu.dot_dimension_numbers<[1], [0], [0], [1], [0, 0, 1, 1], [], []>} : vector<8x8xf32>, vector<8x65xf32>, vector<8x65xf32> -> vector<8x65xf32>
    %29 = arith.addf %25, %28 : vector<8x65xf32>
    %c0_22 = arith.constant 0 : index
    %c16 = arith.constant 16 : index
    %30 = vector.load %arg5[%c0_22, %c16] : memref<8x72xf32, #tpu.memory_space<vmem>>, vector<8x8xf32>
    %c0_23 = arith.constant 0 : index
    %c2 = arith.constant 2 : index
    %31 = vector.load %arg9[%c0_23, %c2] : memref<16x90xf32, #tpu.memory_space<vmem>>, vector<8x65xf32>
    %cst_24 = arith.constant dense<0.000000e+00> : vector<8x65xf32>
    %32 = tpu.matmul %30, %31, %cst_24 {dimension_numbers = #tpu.dot_dimension_numbers<[1], [0], [0], [1], [0, 0, 1, 1], [], []>} : vector<8x8xf32>, vector<8x65xf32>, vector<8x65xf32> -> vector<8x65xf32>
    %33 = arith.addf %29, %32 : vector<8x65xf32>
    %c0_25 = arith.constant 0 : index
    %c24 = arith.constant 24 : index
    %34 = vector.load %arg5[%c0_25, %c24] : memref<8x72xf32, #tpu.memory_space<vmem>>, vector<8x8xf32>
    %c0_26 = arith.constant 0 : index
    %c9 = arith.constant 9 : index
    %35 = vector.load %arg9[%c0_26, %c9] : memref<16x90xf32, #tpu.memory_space<vmem>>, vector<8x65xf32>
    %cst_27 = arith.constant dense<0.000000e+00> : vector<8x65xf32>
    %36 = tpu.matmul %34, %35, %cst_27 {dimension_numbers = #tpu.dot_dimension_numbers<[1], [0], [0], [1], [0, 0, 1, 1], [], []>} : vector<8x8xf32>, vector<8x65xf32>, vector<8x65xf32> -> vector<8x65xf32>
    %37 = arith.addf %33, %36 : vector<8x65xf32>
    %c0_28 = arith.constant 0 : index
    %c32 = arith.constant 32 : index
    %38 = vector.load %arg5[%c0_28, %c32] : memref<8x72xf32, #tpu.memory_space<vmem>>, vector<8x8xf32>
    %c0_29 = arith.constant 0 : index
    %c10 = arith.constant 10 : index
    %39 = vector.load %arg9[%c0_29, %c10] : memref<16x90xf32, #tpu.memory_space<vmem>>, vector<8x65xf32>
    %cst_30 = arith.constant dense<0.000000e+00> : vector<8x65xf32>
    %40 = tpu.matmul %38, %39, %cst_30 {dimension_numbers = #tpu.dot_dimension_numbers<[1], [0], [0], [1], [0, 0, 1, 1], [], []>} : vector<8x8xf32>, vector<8x65xf32>, vector<8x65xf32> -> vector<8x65xf32>
    %41 = arith.addf %37, %40 : vector<8x65xf32>
    %c0_31 = arith.constant 0 : index
    %c40 = arith.constant 40 : index
    %42 = vector.load %arg5[%c0_31, %c40] : memref<8x72xf32, #tpu.memory_space<vmem>>, vector<8x8xf32>
    %c0_32 = arith.constant 0 : index
    %c11 = arith.constant 11 : index
    %43 = vector.load %arg9[%c0_32, %c11] : memref<16x90xf32, #tpu.memory_space<vmem>>, vector<8x65xf32>
    %cst_33 = arith.constant dense<0.000000e+00> : vector<8x65xf32>
    %44 = tpu.matmul %42, %43, %cst_33 {dimension_numbers = #tpu.dot_dimension_numbers<[1], [0], [0], [1], [0, 0, 1, 1], [], []>} : vector<8x8xf32>, vector<8x65xf32>, vector<8x65xf32> -> vector<8x65xf32>
    %45 = arith.addf %41, %44 : vector<8x65xf32>
    %c0_34 = arith.constant 0 : index
    %c48 = arith.constant 48 : index
    %46 = vector.load %arg5[%c0_34, %c48] : memref<8x72xf32, #tpu.memory_space<vmem>>, vector<8x8xf32>
    %c0_35 = arith.constant 0 : index
    %c18 = arith.constant 18 : index
    %47 = vector.load %arg9[%c0_35, %c18] : memref<16x90xf32, #tpu.memory_space<vmem>>, vector<8x65xf32>
    %cst_36 = arith.constant dense<0.000000e+00> : vector<8x65xf32>
    %48 = tpu.matmul %46, %47, %cst_36 {dimension_numbers = #tpu.dot_dimension_numbers<[1], [0], [0], [1], [0, 0, 1, 1], [], []>} : vector<8x8xf32>, vector<8x65xf32>, vector<8x65xf32> -> vector<8x65xf32>
    %49 = arith.addf %45, %48 : vector<8x65xf32>
    %c0_37 = arith.constant 0 : index
    %c56 = arith.constant 56 : index
    %50 = vector.load %arg5[%c0_37, %c56] : memref<8x72xf32, #tpu.memory_space<vmem>>, vector<8x8xf32>
    %c0_38 = arith.constant 0 : index
    %c19 = arith.constant 19 : index
    %51 = vector.load %arg9[%c0_38, %c19] : memref<16x90xf32, #tpu.memory_space<vmem>>, vector<8x65xf32>
    %cst_39 = arith.constant dense<0.000000e+00> : vector<8x65xf32>
    %52 = tpu.matmul %50, %51, %cst_39 {dimension_numbers = #tpu.dot_dimension_numbers<[1], [0], [0], [1], [0, 0, 1, 1], [], []>} : vector<8x8xf32>, vector<8x65xf32>, vector<8x65xf32> -> vector<8x65xf32>
    %53 = arith.addf %49, %52 : vector<8x65xf32>
    %c0_40 = arith.constant 0 : index
    %c64 = arith.constant 64 : index
    %54 = vector.load %arg5[%c0_40, %c64] : memref<8x72xf32, #tpu.memory_space<vmem>>, vector<8x8xf32>
    %c0_41 = arith.constant 0 : index
    %c20_42 = arith.constant 20 : index
    %55 = vector.load %arg9[%c0_41, %c20_42] : memref<16x90xf32, #tpu.memory_space<vmem>>, vector<8x65xf32>
    %cst_43 = arith.constant dense<0.000000e+00> : vector<8x65xf32>
    %56 = tpu.matmul %54, %55, %cst_43 {dimension_numbers = #tpu.dot_dimension_numbers<[1], [0], [0], [1], [0, 0, 1, 1], [], []>} : vector<8x8xf32>, vector<8x65xf32>, vector<8x65xf32> -> vector<8x65xf32>
    %57 = arith.addf %53, %56 : vector<8x65xf32>
    %58 = vector.broadcast %22 : f32 to vector<8x65xf32>
    %59 = arith.mulf %57, %58 : vector<8x65xf32>
    %c0_44 = arith.constant 0 : index
    %c0_45 = arith.constant 0 : index
    %60 = vector.load %arg9[%c0_44, %c0_45] : memref<16x90xf32, #tpu.memory_space<vmem>>, vector<8x65xf32>
    tpu.vector_store %arg9[%c0_44, %c0_45], %59 {strides = array<i32>} : memref<16x90xf32, #tpu.memory_space<vmem>>, vector<8x65xf32>,
    %c0_46 = arith.constant 0 : index
    %c0_47 = arith.constant 0 : index
    %61 = vector.load %arg9[%c0_46, %c0_47] : memref<16x90xf32, #tpu.memory_space<vmem>>, vector<8x45xf32>
    %cst_48 = arith.constant dense<0.000000e+00> : vector<8x8xf32>
    %62 = tpu.matmul %61, %6, %cst_48 {dimension_numbers = #tpu.dot_dimension_numbers<[1], [1], [0], [0], [0, 0, 1, 0], [], []>} : vector<8x45xf32>, vector<8x45xf32>, vector<8x8xf32> -> vector<8x8xf32>
    %c0_49 = arith.constant 0 : index
    %c0_50 = arith.constant 0 : index
    %63 = vector.load %arg10[%c0_49, %c0_50] : memref<8x72xf32, #tpu.memory_space<vmem>>, vector<8x8xf32>
    tpu.vector_store %arg10[%c0_49, %c0_50], %62 {strides = array<i32>} : memref<8x72xf32, #tpu.memory_space<vmem>>, vector<8x8xf32>,
    %c0_51 = arith.constant 0 : index
    %c1_52 = arith.constant 1 : index
    %64 = vector.load %arg9[%c0_51, %c1_52] : memref<16x90xf32, #tpu.memory_space<vmem>>, vector<8x45xf32>
    %cst_53 = arith.constant dense<0.000000e+00> : vector<8x8xf32>
    %65 = tpu.matmul %64, %6, %cst_53 {dimension_numbers = #tpu.dot_dimension_numbers<[1], [1], [0], [0], [0, 0, 1, 0], [], []>} : vector<8x45xf32>, vector<8x45xf32>, vector<8x8xf32> -> vector<8x8xf32>
    %c0_54 = arith.constant 0 : index
    %c8_55 = arith.constant 8 : index
    %66 = vector.load %arg10[%c0_54, %c8_55] : memref<8x72xf32, #tpu.memory_space<vmem>>, vector<8x8xf32>
    tpu.vector_store %arg10[%c0_54, %c8_55], %65 {strides = array<i32>} : memref<8x72xf32, #tpu.memory_space<vmem>>, vector<8x8xf32>,
    %c0_56 = arith.constant 0 : index
    %c2_57 = arith.constant 2 : index
    %67 = vector.load %arg9[%c0_56, %c2_57] : memref<16x90xf32, #tpu.memory_space<vmem>>, vector<8x45xf32>
    %cst_58 = arith.constant dense<0.000000e+00> : vector<8x8xf32>
    %68 = tpu.matmul %67, %6, %cst_58 {dimension_numbers = #tpu.dot_dimension_numbers<[1], [1], [0], [0], [0, 0, 1, 0], [], []>} : vector<8x45xf32>, vector<8x45xf32>, vector<8x8xf32> -> vector<8x8xf32>
    %c0_59 = arith.constant 0 : index
    %c16_60 = arith.constant 16 : index
    %69 = vector.load %arg10[%c0_59, %c16_60] : memref<8x72xf32, #tpu.memory_space<vmem>>, vector<8x8xf32>
    tpu.vector_store %arg10[%c0_59, %c16_60], %68 {strides = array<i32>} : memref<8x72xf32, #tpu.memory_space<vmem>>, vector<8x8xf32>,
    %c0_61 = arith.constant 0 : index
    %c9_62 = arith.constant 9 : index
    %70 = vector.load %arg9[%c0_61, %c9_62] : memref<16x90xf32, #tpu.memory_space<vmem>>, vector<8x45xf32>
    %cst_63 = arith.constant dense<0.000000e+00> : vector<8x8xf32>
    %71 = tpu.matmul %70, %6, %cst_63 {dimension_numbers = #tpu.dot_dimension_numbers<[1], [1], [0], [0], [0, 0, 1, 0], [], []>} : vector<8x45xf32>, vector<8x45xf32>, vector<8x8xf32> -> vector<8x8xf32>
    %c0_64 = arith.constant 0 : index
    %c24_65 = arith.constant 24 : index
    %72 = vector.load %arg10[%c0_64, %c24_65] : memref<8x72xf32, #tpu.memory_space<vmem>>, vector<8x8xf32>
    tpu.vector_store %arg10[%c0_64, %c24_65], %71 {strides = array<i32>} : memref<8x72xf32, #tpu.memory_space<vmem>>, vector<8x8xf32>,
    %c0_66 = arith.constant 0 : index
    %c10_67 = arith.constant 10 : index
    %73 = vector.load %arg9[%c0_66, %c10_67] : memref<16x90xf32, #tpu.memory_space<vmem>>, vector<8x45xf32>
    %cst_68 = arith.constant dense<0.000000e+00> : vector<8x8xf32>
    %74 = tpu.matmul %73, %6, %cst_68 {dimension_numbers = #tpu.dot_dimension_numbers<[1], [1], [0], [0], [0, 0, 1, 0], [], []>} : vector<8x45xf32>, vector<8x45xf32>, vector<8x8xf32> -> vector<8x8xf32>
    %c0_69 = arith.constant 0 : index
    %c32_70 = arith.constant 32 : index
    %75 = vector.load %arg10[%c0_69, %c32_70] : memref<8x72xf32, #tpu.memory_space<vmem>>, vector<8x8xf32>
    tpu.vector_store %arg10[%c0_69, %c32_70], %74 {strides = array<i32>} : memref<8x72xf32, #tpu.memory_space<vmem>>, vector<8x8xf32>,
    %c0_71 = arith.constant 0 : index
    %c11_72 = arith.constant 11 : index
    %76 = vector.load %arg9[%c0_71, %c11_72] : memref<16x90xf32, #tpu.memory_space<vmem>>, vector<8x45xf32>
    %cst_73 = arith.constant dense<0.000000e+00> : vector<8x8xf32>
    %77 = tpu.matmul %76, %6, %cst_73 {dimension_numbers = #tpu.dot_dimension_numbers<[1], [1], [0], [0], [0, 0, 1, 0], [], []>} : vector<8x45xf32>, vector<8x45xf32>, vector<8x8xf32> -> vector<8x8xf32>
    %c0_74 = arith.constant 0 : index
    %c40_75 = arith.constant 40 : index
    %78 = vector.load %arg10[%c0_74, %c40_75] : memref<8x72xf32, #tpu.memory_space<vmem>>, vector<8x8xf32>
    tpu.vector_store %arg10[%c0_74, %c40_75], %77 {strides = array<i32>} : memref<8x72xf32, #tpu.memory_space<vmem>>, vector<8x8xf32>,
    %c0_76 = arith.constant 0 : index
    %c18_77 = arith.constant 18 : index
    %79 = vector.load %arg9[%c0_76, %c18_77] : memref<16x90xf32, #tpu.memory_space<vmem>>, vector<8x45xf32>
    %cst_78 = arith.constant dense<0.000000e+00> : vector<8x8xf32>
    %80 = tpu.matmul %79, %6, %cst_78 {dimension_numbers = #tpu.dot_dimension_numbers<[1], [1], [0], [0], [0, 0, 1, 0], [], []>} : vector<8x45xf32>, vector<8x45xf32>, vector<8x8xf32> -> vector<8x8xf32>
    %c0_79 = arith.constant 0 : index
    %c48_80 = arith.constant 48 : index
    %81 = vector.load %arg10[%c0_79, %c48_80] : memref<8x72xf32, #tpu.memory_space<vmem>>, vector<8x8xf32>
    tpu.vector_store %arg10[%c0_79, %c48_80], %80 {strides = array<i32>} : memref<8x72xf32, #tpu.memory_space<vmem>>, vector<8x8xf32>,
    %c0_81 = arith.constant 0 : index
    %c19_82 = arith.constant 19 : index
    %82 = vector.load %arg9[%c0_81, %c19_82] : memref<16x90xf32, #tpu.memory_space<vmem>>, vector<8x45xf32>
    %cst_83 = arith.constant dense<0.000000e+00> : vector<8x8xf32>
    %83 = tpu.matmul %82, %6, %cst_83 {dimension_numbers = #tpu.dot_dimension_numbers<[1], [1], [0], [0], [0, 0, 1, 0], [], []>} : vector<8x45xf32>, vector<8x45xf32>, vector<8x8xf32> -> vector<8x8xf32>
    %c0_84 = arith.constant 0 : index
    %c56_85 = arith.constant 56 : index
    %84 = vector.load %arg10[%c0_84, %c56_85] : memref<8x72xf32, #tpu.memory_space<vmem>>, vector<8x8xf32>
    tpu.vector_store %arg10[%c0_84, %c56_85], %83 {strides = array<i32>} : memref<8x72xf32, #tpu.memory_space<vmem>>, vector<8x8xf32>,
    %c0_86 = arith.constant 0 : index
    %c20_87 = arith.constant 20 : index
    %85 = vector.load %arg9[%c0_86, %c20_87] : memref<16x90xf32, #tpu.memory_space<vmem>>, vector<8x45xf32>
    %cst_88 = arith.constant dense<0.000000e+00> : vector<8x8xf32>
    %86 = tpu.matmul %85, %6, %cst_88 {dimension_numbers = #tpu.dot_dimension_numbers<[1], [1], [0], [0], [0, 0, 1, 0], [], []>} : vector<8x45xf32>, vector<8x45xf32>, vector<8x8xf32> -> vector<8x8xf32>
    %c0_89 = arith.constant 0 : index
    %c64_90 = arith.constant 64 : index
    %87 = vector.load %arg10[%c0_89, %c64_90] : memref<8x72xf32, #tpu.memory_space<vmem>>, vector<8x8xf32>
    tpu.vector_store %arg10[%c0_89, %c64_90], %86 {strides = array<i32>} : memref<8x72xf32, #tpu.memory_space<vmem>>, vector<8x8xf32>,
    %c0_91 = arith.constant 0 : index
    %c0_92 = arith.constant 0 : index
    %88 = vector.load %arg10[%c0_91, %c0_92] : memref<8x72xf32, #tpu.memory_space<vmem>>, vector<8x72xf32>
    %89 = arith.mulf %88, %88 : vector<8x72xf32>
    %cst_93 = arith.constant dense<0.000000e+00> : vector<8xf32>
    %90 = vector.multi_reduction <add>, %89, %cst_93 [1] : vector<8x72xf32> to vector<8xf32>
    %91 = vector.shape_cast %90 : vector<8xf32> to vector<8x1xf32>
    %92 = math.sqrt %91 : vector<8x1xf32>
    %c0_94 = arith.constant 0 : index
    %c0_95 = arith.constant 0 : index
    %93 = vector.load %arg5[%c0_94, %c0_95] : memref<8x72xf32, #tpu.memory_space<vmem>>, vector<8x72xf32>
    %cst_96 = arith.constant 9.99999996E-13 : f32
    %94 = vector.broadcast %cst_96 : f32 to vector<8x1xf32>
    %95 = arith.maximumf %92, %94 : vector<8x1xf32>
    %cst_97 = arith.constant 5.000000e-01 : f32
    %96 = vector.broadcast %cst_97 : f32 to vector<8x1xf32>
    %97 = arith.divf %96, %95 : vector<8x1xf32>
    %98 = vector.broadcast %97 : vector<8x1xf32> to vector<8x72xf32>
    %99 = arith.mulf %88, %98 : vector<8x72xf32>
    %100 = arith.addf %93, %99 : vector<8x72xf32>
    %c0_98 = arith.constant 0 : index
    %c0_99 = arith.constant 0 : index
    %c0_100 = arith.constant 0 : index
    %101 = vector.load %arg3[%c0_98, %c0_99, %c0_100] : memref<1x8x342xf32, #tpu.memory_space<vmem>>, vector<1x8x288xf32>
    %102 = vector.shape_cast %101 : vector<1x8x288xf32> to vector<8x288xf32>
    %c0_101 = arith.constant 0 : index
    %c0_102 = arith.constant 0 : index
    %103 = vector.load %arg11[%c0_101, %c0_102] : memref<72x288xf32, #tpu.memory_space<vmem>>, vector<8x288xf32>
    tpu.vector_store %arg11[%c0_101, %c0_102], %102 {strides = array<i32>} : memref<72x288xf32, #tpu.memory_space<vmem>>, vector<8x288xf32>,
    %c0_103 = arith.constant 0 : index
    %c0_104 = arith.constant 0 : index
    %c1_105 = arith.constant 1 : index
    %104 = vector.load %arg3[%c0_103, %c0_104, %c1_105] : memref<1x8x342xf32, #tpu.memory_space<vmem>>, vector<1x8x288xf32>
    %105 = vector.shape_cast %104 : vector<1x8x288xf32> to vector<8x288xf32>
    %c8_106 = arith.constant 8 : index
    %c0_107 = arith.constant 0 : index
    %106 = vector.load %arg11[%c8_106, %c0_107] : memref<72x288xf32, #tpu.memory_space<vmem>>, vector<8x288xf32>
    tpu.vector_store %arg11[%c8_106, %c0_107], %105 {strides = array<i32>} : memref<72x288xf32, #tpu.memory_space<vmem>>, vector<8x288xf32>,
    %c0_108 = arith.constant 0 : index
    %c0_109 = arith.constant 0 : index
    %c2_110 = arith.constant 2 : index
    %107 = vector.load %arg3[%c0_108, %c0_109, %c2_110] : memref<1x8x342xf32, #tpu.memory_space<vmem>>, vector<1x8x288xf32>
    %108 = vector.shape_cast %107 : vector<1x8x288xf32> to vector<8x288xf32>
    %c16_111 = arith.constant 16 : index
    %c0_112 = arith.constant 0 : index
    %109 = vector.load %arg11[%c16_111, %c0_112] : memref<72x288xf32, #tpu.memory_space<vmem>>, vector<8x288xf32>
    tpu.vector_store %arg11[%c16_111, %c0_112], %108 {strides = array<i32>} : memref<72x288xf32, #tpu.memory_space<vmem>>, vector<8x288xf32>,
    %c0_113 = arith.constant 0 : index
    %c0_114 = arith.constant 0 : index
    %c18_115 = arith.constant 18 : index
    %110 = vector.load %arg3[%c0_113, %c0_114, %c18_115] : memref<1x8x342xf32, #tpu.memory_space<vmem>>, vector<1x8x288xf32>
    %111 = vector.shape_cast %110 : vector<1x8x288xf32> to vector<8x288xf32>
    %c24_116 = arith.constant 24 : index
    %c0_117 = arith.constant 0 : index
    %112 = vector.load %arg11[%c24_116, %c0_117] : memref<72x288xf32, #tpu.memory_space<vmem>>, vector<8x288xf32>
    tpu.vector_store %arg11[%c24_116, %c0_117], %111 {strides = array<i32>} : memref<72x288xf32, #tpu.memory_space<vmem>>, vector<8x288xf32>,
    %c0_118 = arith.constant 0 : index
    %c0_119 = arith.constant 0 : index
    %c19_120 = arith.constant 19 : index
    %113 = vector.load %arg3[%c0_118, %c0_119, %c19_120] : memref<1x8x342xf32, #tpu.memory_space<vmem>>, vector<1x8x288xf32>
    %114 = vector.shape_cast %113 : vector<1x8x288xf32> to vector<8x288xf32>
    %c32_121 = arith.constant 32 : index
    %c0_122 = arith.constant 0 : index
    %115 = vector.load %arg11[%c32_121, %c0_122] : memref<72x288xf32, #tpu.memory_space<vmem>>, vector<8x288xf32>
    tpu.vector_store %arg11[%c32_121, %c0_122], %114 {strides = array<i32>} : memref<72x288xf32, #tpu.memory_space<vmem>>, vector<8x288xf32>,
    %c0_123 = arith.constant 0 : index
    %c0_124 = arith.constant 0 : index
    %c20_125 = arith.constant 20 : index
    %116 = vector.load %arg3[%c0_123, %c0_124, %c20_125] : memref<1x8x342xf32, #tpu.memory_space<vmem>>, vector<1x8x288xf32>
    %117 = vector.shape_cast %116 : vector<1x8x288xf32> to vector<8x288xf32>
    %c40_126 = arith.constant 40 : index
    %c0_127 = arith.constant 0 : index
    %118 = vector.load %arg11[%c40_126, %c0_127] : memref<72x288xf32, #tpu.memory_space<vmem>>, vector<8x288xf32>
    tpu.vector_store %arg11[%c40_126, %c0_127], %117 {strides = array<i32>} : memref<72x288xf32, #tpu.memory_space<vmem>>, vector<8x288xf32>,
    %c0_128 = arith.constant 0 : index
    %c0_129 = arith.constant 0 : index
    %c36 = arith.constant 36 : index
    %119 = vector.load %arg3[%c0_128, %c0_129, %c36] : memref<1x8x342xf32, #tpu.memory_space<vmem>>, vector<1x8x288xf32>
    %120 = vector.shape_cast %119 : vector<1x8x288xf32> to vector<8x288xf32>
    %c48_130 = arith.constant 48 : index
    %c0_131 = arith.constant 0 : index
    %121 = vector.load %arg11[%c48_130, %c0_131] : memref<72x288xf32, #tpu.memory_space<vmem>>, vector<8x288xf32>
    tpu.vector_store %arg11[%c48_130, %c0_131], %120 {strides = array<i32>} : memref<72x288xf32, #tpu.memory_space<vmem>>, vector<8x288xf32>,
    %c0_132 = arith.constant 0 : index
    %c0_133 = arith.constant 0 : index
    %c37 = arith.constant 37 : index
    %122 = vector.load %arg3[%c0_132, %c0_133, %c37] : memref<1x8x342xf32, #tpu.memory_space<vmem>>, vector<1x8x288xf32>
    %123 = vector.shape_cast %122 : vector<1x8x288xf32> to vector<8x288xf32>
    %c56_134 = arith.constant 56 : index
    %c0_135 = arith.constant 0 : index
    %124 = vector.load %arg11[%c56_134, %c0_135] : memref<72x288xf32, #tpu.memory_space<vmem>>, vector<8x288xf32>
    tpu.vector_store %arg11[%c56_134, %c0_135], %123 {strides = array<i32>} : memref<72x288xf32, #tpu.memory_space<vmem>>, vector<8x288xf32>,
    %c0_136 = arith.constant 0 : index
    %c0_137 = arith.constant 0 : index
    %c38 = arith.constant 38 : index
    %125 = vector.load %arg3[%c0_136, %c0_137, %c38] : memref<1x8x342xf32, #tpu.memory_space<vmem>>, vector<1x8x288xf32>
    %126 = vector.shape_cast %125 : vector<1x8x288xf32> to vector<8x288xf32>
    %c64_138 = arith.constant 64 : index
    %c0_139 = arith.constant 0 : index
    %127 = vector.load %arg11[%c64_138, %c0_139] : memref<72x288xf32, #tpu.memory_space<vmem>>, vector<8x288xf32>
    tpu.vector_store %arg11[%c64_138, %c0_139], %126 {strides = array<i32>} : memref<72x288xf32, #tpu.memory_space<vmem>>, vector<8x288xf32>,
    %c0_140 = arith.constant 0 : index
    %c0_141 = arith.constant 0 : index
    %128 = vector.load %arg11[%c0_140, %c0_141] : memref<72x288xf32, #tpu.memory_space<vmem>>, vector<72x288xf32>
    %cst_142 = arith.constant dense<0.000000e+00> : vector<8x288xf32>
    %129 = tpu.matmul %100, %128, %cst_142 {dimension_numbers = #tpu.dot_dimension_numbers<[1], [0], [0], [1], [0, 0, 1, 1], [], []>} : vector<8x72xf32>, vector<72x288xf32>, vector<8x288xf32> -> vector<8x288xf32>
    %cst_143 = arith.constant 0.000000e+00 : f32
    %130 = vector.broadcast %cst_143 : f32 to vector<8x288xf32>
    %131 = arith.maximumf %129, %130 : vector<8x288xf32>
    %c0_144 = arith.constant 0 : index
    %c0_145 = arith.constant 0 : index
    %132 = vector.load %arg1[%c0_144, %c0_145] : memref<1x288xf32, #tpu.memory_space<vmem>>, vector<1x288xf32>
    %133 = vector.broadcast %132 : vector<1x288xf32> to vector<8x288xf32>
    %134 = arith.mulf %131, %133 : vector<8x288xf32>
    %cst_146 = arith.constant 0.000000e+00 : f32
    %135 = vector.broadcast %cst_146 : f32 to vector<8x342xf32>
    %c0_147 = arith.constant 0 : index
    %c0_148 = arith.constant 0 : index
    %136 = vector.load %arg12[%c0_147, %c0_148] : memref<8x342xf32, #tpu.memory_space<vmem>>, vector<8x342xf32>
    tpu.vector_store %arg12[%c0_147, %c0_148], %135 {strides = array<i32>} : memref<8x342xf32, #tpu.memory_space<vmem>>, vector<8x342xf32>,
    %c0_149 = arith.constant 0 : index
    %c19_150 = arith.constant 19 : index
    %137 = vector.load %arg12[%c0_149, %c19_150] : memref<8x342xf32, #tpu.memory_space<vmem>>, vector<8x288xf32>
    tpu.vector_store %arg12[%c0_149, %c19_150], %134 {strides = array<i32>} : memref<8x342xf32, #tpu.memory_space<vmem>>, vector<8x288xf32>,
    %c0_151 = arith.constant 0 : index
    %c0_152 = arith.constant 0 : index
    %138 = vector.load %arg12[%c0_151, %c0_152] : memref<8x342xf32, #tpu.memory_space<vmem>>, vector<8x288xf32>
    %c0_153 = arith.constant 0 : index
    %c0_154 = arith.constant 0 : index
    %139 = vector.load %arg11[%c0_153, %c0_154] : memref<72x288xf32, #tpu.memory_space<vmem>>, vector<8x288xf32>
    tpu.vector_store %arg11[%c0_153, %c0_154], %138 {strides = array<i32>} : memref<72x288xf32, #tpu.memory_space<vmem>>, vector<8x288xf32>,
    %c0_155 = arith.constant 0 : index
    %c1_156 = arith.constant 1 : index
    %140 = vector.load %arg12[%c0_155, %c1_156] : memref<8x342xf32, #tpu.memory_space<vmem>>, vector<8x288xf32>
    %c8_157 = arith.constant 8 : index
    %c0_158 = arith.constant 0 : index
    %141 = vector.load %arg11[%c8_157, %c0_158] : memref<72x288xf32, #tpu.memory_space<vmem>>, vector<8x288xf32>
    tpu.vector_store %arg11[%c8_157, %c0_158], %140 {strides = array<i32>} : memref<72x288xf32, #tpu.memory_space<vmem>>, vector<8x288xf32>,
    %c0_159 = arith.constant 0 : index
    %c2_160 = arith.constant 2 : index
    %142 = vector.load %arg12[%c0_159, %c2_160] : memref<8x342xf32, #tpu.memory_space<vmem>>, vector<8x288xf32>
    %c16_161 = arith.constant 16 : index
    %c0_162 = arith.constant 0 : index
    %143 = vector.load %arg11[%c16_161, %c0_162] : memref<72x288xf32, #tpu.memory_space<vmem>>, vector<8x288xf32>
    tpu.vector_store %arg11[%c16_161, %c0_162], %142 {strides = array<i32>} : memref<72x288xf32, #tpu.memory_space<vmem>>, vector<8x288xf32>,
    %c0_163 = arith.constant 0 : index
    %c18_164 = arith.constant 18 : index
    %144 = vector.load %arg12[%c0_163, %c18_164] : memref<8x342xf32, #tpu.memory_space<vmem>>, vector<8x288xf32>
    %c24_165 = arith.constant 24 : index
    %c0_166 = arith.constant 0 : index
    %145 = vector.load %arg11[%c24_165, %c0_166] : memref<72x288xf32, #tpu.memory_space<vmem>>, vector<8x288xf32>
    tpu.vector_store %arg11[%c24_165, %c0_166], %144 {strides = array<i32>} : memref<72x288xf32, #tpu.memory_space<vmem>>, vector<8x288xf32>,
    %c0_167 = arith.constant 0 : index
    %c19_168 = arith.constant 19 : index
    %146 = vector.load %arg12[%c0_167, %c19_168] : memref<8x342xf32, #tpu.memory_space<vmem>>, vector<8x288xf32>
    %c32_169 = arith.constant 32 : index
    %c0_170 = arith.constant 0 : index
    %147 = vector.load %arg11[%c32_169, %c0_170] : memref<72x288xf32, #tpu.memory_space<vmem>>, vector<8x288xf32>
    tpu.vector_store %arg11[%c32_169, %c0_170], %146 {strides = array<i32>} : memref<72x288xf32, #tpu.memory_space<vmem>>, vector<8x288xf32>,
    %c0_171 = arith.constant 0 : index
    %c20_172 = arith.constant 20 : index
    %148 = vector.load %arg12[%c0_171, %c20_172] : memref<8x342xf32, #tpu.memory_space<vmem>>, vector<8x288xf32>
    %c40_173 = arith.constant 40 : index
    %c0_174 = arith.constant 0 : index
    %149 = vector.load %arg11[%c40_173, %c0_174] : memref<72x288xf32, #tpu.memory_space<vmem>>, vector<8x288xf32>
    tpu.vector_store %arg11[%c40_173, %c0_174], %148 {strides = array<i32>} : memref<72x288xf32, #tpu.memory_space<vmem>>, vector<8x288xf32>,
    %c0_175 = arith.constant 0 : index
    %c36_176 = arith.constant 36 : index
    %150 = vector.load %arg12[%c0_175, %c36_176] : memref<8x342xf32, #tpu.memory_space<vmem>>, vector<8x288xf32>
    %c48_177 = arith.constant 48 : index
    %c0_178 = arith.constant 0 : index
    %151 = vector.load %arg11[%c48_177, %c0_178] : memref<72x288xf32, #tpu.memory_space<vmem>>, vector<8x288xf32>
    tpu.vector_store %arg11[%c48_177, %c0_178], %150 {strides = array<i32>} : memref<72x288xf32, #tpu.memory_space<vmem>>, vector<8x288xf32>,
    %c0_179 = arith.constant 0 : index
    %c37_180 = arith.constant 37 : index
    %152 = vector.load %arg12[%c0_179, %c37_180] : memref<8x342xf32, #tpu.memory_space<vmem>>, vector<8x288xf32>
    %c56_181 = arith.constant 56 : index
    %c0_182 = arith.constant 0 : index
    %153 = vector.load %arg11[%c56_181, %c0_182] : memref<72x288xf32, #tpu.memory_space<vmem>>, vector<8x288xf32>
    tpu.vector_store %arg11[%c56_181, %c0_182], %152 {strides = array<i32>} : memref<72x288xf32, #tpu.memory_space<vmem>>, vector<8x288xf32>,
    %c0_183 = arith.constant 0 : index
    %c38_184 = arith.constant 38 : index
    %154 = vector.load %arg12[%c0_183, %c38_184] : memref<8x342xf32, #tpu.memory_space<vmem>>, vector<8x288xf32>
    %c64_185 = arith.constant 64 : index
    %c0_186 = arith.constant 0 : index
    %155 = vector.load %arg11[%c64_185, %c0_186] : memref<72x288xf32, #tpu.memory_space<vmem>>, vector<8x288xf32>
    tpu.vector_store %arg11[%c64_185, %c0_186], %154 {strides = array<i32>} : memref<72x288xf32, #tpu.memory_space<vmem>>, vector<8x288xf32>,
    %c0_187 = arith.constant 0 : index
    %c0_188 = arith.constant 0 : index
    %156 = vector.load %arg6[%c0_187, %c0_188] : memref<8x72xf32, #tpu.memory_space<vmem>>, vector<8x72xf32>
    %c0_189 = arith.constant 0 : index
    %c0_190 = arith.constant 0 : index
    %157 = vector.load %arg11[%c0_189, %c0_190] : memref<72x288xf32, #tpu.memory_space<vmem>>, vector<72x288xf32>
    %cst_191 = arith.constant dense<0.000000e+00> : vector<8x288xf32>
    %158 = tpu.matmul %156, %157, %cst_191 {dimension_numbers = #tpu.dot_dimension_numbers<[1], [0], [0], [1], [0, 0, 1, 1], [], []>} : vector<8x72xf32>, vector<72x288xf32>, vector<8x288xf32> -> vector<8x288xf32>
    %c0_192 = arith.constant 0 : index
    %c0_193 = arith.constant 0 : index
    %159 = vector.load %arg7[%c0_192, %c0_193] : memref<8x1xf32, #tpu.memory_space<vmem>>, vector<8x1xf32>
    %160 = vector.broadcast %159 : vector<8x1xf32> to vector<8x288xf32>
    %161 = arith.addf %158, %160 : vector<8x288xf32>
    %c0_194 = arith.constant 0 : index
    %c0_195 = arith.constant 0 : index
    %c19_196 = arith.constant 19 : index
    %162 = vector.load %arg3[%c0_194, %c0_195, %c19_196] : memref<1x8x342xf32, #tpu.memory_space<vmem>>, vector<1x8x288xf32>
    %163 = vector.shape_cast %162 : vector<1x8x288xf32> to vector<8x288xf32>
    %cst_197 = arith.constant 1.000000e+00 : f32
    %164 = vector.broadcast %cst_197 : f32 to vector<8x288xf32>
    %165 = arith.mulf %161, %164 : vector<8x288xf32>
    %166 = arith.addf %165, %163 : vector<8x288xf32>
    %c0_198 = arith.constant 0 : index
    %c0_199 = arith.constant 0 : index
    %c0_200 = arith.constant 0 : index
    %167 = vector.load %arg8[%c0_198, %c0_199, %c0_200] : memref<1x8x288xf32, #tpu.memory_space<vmem>>, vector<1x8x288xf32>
    %168 = vector.shape_cast %167 : vector<1x8x288xf32> to vector<8x288xf32>
    %169 = vector.shape_cast %166 : vector<8x288xf32> to vector<1x8x288xf32>
    tpu.vector_store %arg8[%c0_198, %c0_199, %c0_200], %169 {strides = array<i32>} : memref<1x8x288xf32, #tpu.memory_space<vmem>>, vector<1x8x288xf32>,
    return
  }
  func.func @transform_0(%arg0: i32) -> (i32, i32) {
    %c0_i32 = arith.constant 0 : i32
    %c0_i32_0 = arith.constant 0 : i32
    %c0_i32_1 = arith.constant 0 : i32
    return %c0_i32, %c0_i32_0 : i32, i32
  }
  func.func @transform_1(%arg0: i32) -> (i32, i32, i32) {
    %c0_i32 = arith.constant 0 : i32
    %c0_i32_0 = arith.constant 0 : i32
    %c0_i32_1 = arith.constant 0 : i32
    return %arg0, %c0_i32, %c0_i32_0 : i32, i32, i32
  }
  func.func @transform_2(%arg0: i32) -> (i32, i32, i32) {
    %c0_i32 = arith.constant 0 : i32
    %c0_i32_0 = arith.constant 0 : i32
    %c0_i32_1 = arith.constant 0 : i32
    return %arg0, %c0_i32, %c0_i32_0 : i32, i32, i32
  }
  func.func @transform_3(%arg0: i32) -> (i32, i32) {
    %c0_i32 = arith.constant 0 : i32
    %c0_i32_0 = arith.constant 0 : i32
    %c0_i32_1 = arith.constant 0 : i32
    return %c0_i32, %c0_i32_0 : i32, i32
  }
  func.func @transform_4(%arg0: i32) -> (i32, i32) {
    %c0_i32 = arith.constant 0 : i32
    %c0_i32_0 = arith.constant 0 : i32
    %c0_i32_1 = arith.constant 0 : i32
    return %c0_i32, %c0_i32_0 : i32, i32
  }
  func.func @transform_5(%arg0: i32) -> (i32, i32) {
    %c0_i32 = arith.constant 0 : i32
    %c0_i32_0 = arith.constant 0 : i32
    %c0_i32_1 = arith.constant 0 : i32
    return %c0_i32, %c0_i32_0 : i32, i32
  }
  func.func @transform_6(%arg0: i32) -> (i32, i32) {
    %c0_i32 = arith.constant 0 : i32
    %c0_i32_0 = arith.constant 0 : i32
    %c0_i32_1 = arith.constant 0 : i32
    return %c0_i32, %c0_i32_0 : i32, i32
  }
  func.func @transform_7(%arg0: i32) -> (i32, i32, i32) {
    %c0_i32 = arith.constant 0 : i32
    %c0_i32_0 = arith.constant 0 : i32
    %c0_i32_1 = arith.constant 0 : i32
    return %arg0, %c0_i32, %c0_i32_0 : i32, i32, i32
  }
}

</mosaic_0001>

<bundles_post_ra>
// kernel: tpu_custom_call.1
= control target key start
LH: loop header
LB: loop body
LE: loop exit
PB: predicated region body
PF: predicated region fallthrough
CT: control target
= control target key end

     0   :  { %s2771_s0 = inlined_call_operand.hbm [shape: f32[1,288], index: 0, kind: input, shape index: {}]   ;;  %s2772_s1 = inlined_call_operand.hbm [shape: f32[2,72,90], index: 1, kind: input, shape index: {}]   ;;  %s2773_s2 = inlined_call_operand.hbm [shape: f32[2,8,342], index: 2, kind: input, shape index: {}]   ;;  %s2774_s3 = inlined_call_operand.hbm [shape: f32[16,72], index: 3, kind: input, shape index: {}]   ;;  %s2775_s4 = inlined_call_operand.vmem [shape: f32[8,72], index: 4, kind: input, shape index: {}]   ;;  %s2776_s5 = inlined_call_operand.hbm [shape: f32[8,72], index: 5, kind: input, shape index: {}]   ;;  %s2777_s6 = inlined_call_operand.vmem [shape: f32[8,1], index: 6, kind: input, shape index: {}]   ;;  %s2778_s7 = inlined_call_operand.hbm [shape: f32[2,8,288], index: 7, kind: output, shape index: {}]  }
   0x1   :  { %2787 = sst [smem:[#allocation24_spill]] %s2771_s0 }
   0x2   :  { %2788 = sst [smem:[#allocation25_spill]] %s2774_s3 }
   0x3   :  { %12 = vsyncpa [#allocation7], 0 }
   0x4   :  { %13 = vsyncpa [#allocation10], 0 }
   0x5   :  { %15 = vsyncpa [#allocation10 + $0x1], 0 }
   0x6   :  { %16 = vsyncpa [#allocation13], 0 }
   0x7   :  { %17 = vsyncpa [#allocation8], 0 }
   0x8   :  { %19 = vsyncpa [#allocation8 + $0x1], 0  ;;  %s2297_s24 = smov 0   ;;  %s2299_s25 = smov 0  }
   0x9   :  { %s2301_s26 = smov 0   ;;  %s2303_s27 = smov 0  }
   0xa LB: > { %2789 = sst [smem:[#allocation20_spill]] %s2208_s24  ;;  %s2318_s28 = sadd.s32 4294967295, %s2220_s27   ;;  %s2220_s27 = sphi %s2303_s27, %s2811_s27   ;;  %s2216_s26 = sphi %s2301_s26, %s2815_s26   ;;  %s2212_s25 = sphi %s2299_s25, %s2814_s25   ;;  %s2208_s24 = sphi %s2297_s24, %s2813_s24  }
   0xb   : > { %s1803_s29 = sadd.s32 4294967294, %s2220_s27   ;;  %p66_p0 = scmp.ne.s32.totalorder %s2212_s25, %s2208_s24 }
   0xc   : > { %p2786_p1 = scmp.eq.s32.totalorder %s2318_s28, 0  ;;  %p200_p2 = scmp.eq.s32.totalorder %s2318_s28, 1 }
   0xd   : > { %p206_p3 = scmp.eq.s32.totalorder %s1803_s29, 1  ;;  %p1804_p5 = scmp.ge.s32.totalorder %s2220_s27, 1 }
   0xe   : > { %p2327_p4 = por %p2786_p1, %p66_p0  ;;  %p213_p7 = scmp.lt.s32.totalorder %s2220_s27, 3 }
   0xf   : > { %p2332_p6 = por %p206_p3, %p66_p0  ;;  %s2793_s3 = sld [smem:[#allocation25_spill]] }
  0x10   : > { %p2340_p8 = pnand %p1804_p5, %p213_p7  ;;  %s2222_s13 = smov [#allocation12]  }
  0x11   : > { %s2791_s8 = scalar_select %p2332_p6, 1, 0 }
  0x12   : > { %p1888_p9 = pneg %p2340_p8  ;;  %s238_s14 = sshll.u32 %s2222_s13, 4  ;;  %s239_s14 = int_to_ptr.vmem [resolvable:$true] %s238_s14 }
  0x13   : > { %2792 = sst [smem:[#allocation21_spill]] %s2791_s8  ;;  %s2354_s16 = sadd.s32 1, %s2220_s27  }
  0x14   : > { %p2348_p10 = pnand %p1888_p9, %p2786_p1  ;;  %2796 = sst [smem:[#allocation22_spill]] %s2354_s16 }
  0x15   : > { %s236_s11 = sshll.u32 %s2793_s3, 4  ;;  %s2779_s17 = smov 128   ;;  %s237_s11 = int_to_ptr.hbm [resolvable:$true] %s236_s11 }
  0x16   : > { %s2780_s18 = smov 8   ;;  %s50_s19 = ssub.s32 %s2220_s27, %s2354_s16 }
  0x17   : > { %1894 = dma.hbm_to_vmem [thread:$0]  (!%p2348_p10), %s237_s11, 256, %s239_s14, [#allocation13], %s2779_s17, %s2779_s17, %s2780_s18  }
  0x18   : > { %s53_s20 = sadd.s32 1, %s2216_s26  ;;  %p51_p12 = scmp.eq.s32.totalorder %s50_s19, 0 }
  0x19   : > { %p60_p13 = scmp.ne.s32.totalorder %s2216_s26, %s2212_s25  ;;  %p61_p0 = scmp.eq.s32.totalorder %s2220_s27, 0 }
  0x1a   : > { %p1912_p3 = scmp.lt.s32.totalorder %s2220_s27, 2  ;;  %s270_s23 = sand.u32 1, %s2220_s27  }
  0x1b   : > { %s2369_s21 = scalar_select %p51_p12, %s2216_s26, %s53_s20  }
  0x1c   : > { %p62_p5 = por %p61_p0, %p60_p13  ;;  %p2373_p7 = por %p200_p2, %p60_p13 }
  0x1d   : > { %2797 = sst [smem:[#allocation23_spill]] %s2369_s21  ;;  %s2783_s29 = sand.u32 1, %s2216_s26  }
  0x1e   : > { %s1853_s9 = smul.u32 72, %s2783_s29  ;;  %p2382_p9 = pnand %p1912_p3, %p62_p5 }
  0x1f   : > { %s1854_s10 = smul.u32 72, %s2220_s27  ;;  %s2800_s0 = sld [smem:[#allocation24_spill]] }
  0x20   : > { %s274_s3 = scalar_lea.vmem [#allocation9], %s1853_s9  ;;  %s2392_s29 = scalar_lea.sflag [#allocation10], %s270_s23 }
  0x21   : > { %s279_s18 = scalar_lea.hbm %s2772_s1, %s1854_s10  ;;  %s282_s21 = sshll.u32 %s274_s3, 4  ;;  %s283_s21 = int_to_ptr.vmem [resolvable:$true] %s282_s21 }
  0x22   : > { %s280_s16 = sshll.u32 %s279_s18, 4  ;;  %p2030_p12 = pneg %p2382_p9  ;;  %s281_s16 = int_to_ptr.hbm [resolvable:$true] %s280_s16 }
  0x23   : > { %s2026_s8 = sshra.s32 %s281_s16, 4  ;;  %s2033_s9 = scalar_lea.hbm %s2772_s1, 144  ;;  %s2027_s8 = int_to_ptr.hbm [resolvable:$true] %s2026_s8 }
  0x24   : > { %s2028_s24 = scalar_lea.hbm %s2027_s8, 72  ;;  %p2034_p3 = scmp.lt.s32.totalorder %s2027_s8, %s2772_s1 }
  0x25   : > { %s225_s19 = sshll.u32 %s2800_s0, 4  ;;  %p2029_p2 = scmp.ne.s32.totalorder %s2027_s8, %s2028_s24  ;;  %s226_s19 = int_to_ptr.hbm [resolvable:$true] %s225_s19 }
  0x26   : > { %p2035_p5 = scmp.lt.s32.totalorder %s2033_s9, %s2028_s24 }
  0x27   : > { %p2031_p13 = pnand %p2030_p12, %p2029_p2 }
  0x28   : > { %p2036_p11 = por %p2035_p5, %p2034_p3 }
  0x29   : > { %p2032_p0 = pneg %p2031_p13 }
  0x2b   : > { %p2037_p1 = pnand %p2036_p11, %p2032_p0 }
  0x2d   : > { %2040 = shalt.err (!%p2037_p1)
}
  0x2e   : > { %s2801_s23 = smov 8   ;;  %s2802_s10 = smov 128  }
  0x2f   : > { %1901 = dma.hbm_to_vmem [thread:$0]  (!%p2382_p9), %s281_s16, 1152, %s283_s21, %s2392_s29, %s2802_s10, %s2802_s10, %s2801_s23  }
  0x30   : > { %s2225_s14 = smov [#allocation6]   ;;  %s254_s24 = sshll.u32 %s2776_s5, 4  ;;  %s255_s24 = int_to_ptr.hbm [resolvable:$true] %s254_s24 }
  0x31   : > { %s227_s20 = sshll.u32 %s2225_s14, 4  ;;  %s2803_s17 = sand.u32 1, %s2216_s26   ;;  %s228_s20 = int_to_ptr.vmem [resolvable:$true] %s227_s20 }
  0x32   : > { %1891 = dma.hbm_to_vmem [thread:$0]  (!%p2348_p10), %s226_s19, 48, %s228_s20, [#allocation7]  }
  0x33   : > { %s1855_s9 = smul.u32 24, %s2803_s17  ;;  %s2226_s3 = smov [#allocation14]  }
  0x34   : > { %s256_s18 = sshll.u32 %s2226_s3, 4  ;;  %s1856_s0 = smul.u32 24, %s2220_s27  ;;  %s257_s18 = int_to_ptr.vmem [resolvable:$true] %s256_s18 }
  0x35   : > { %1897 = dma.hbm_to_vmem [thread:$0]  (!%p2348_p10), %s255_s24, 128, %s257_s18, [#allocation13]  }
  0x36   : > { %s301_s23 = scalar_lea.hbm %s2773_s2, %s1856_s0  ;;  %s296_s10 = scalar_lea.vmem [#allocation11], %s1855_s9 }
  0x37   : > { %s305_s14 = sshll.u32 %s296_s10, 4  ;;  %s303_s13 = sshll.u32 %s301_s23, 4  ;;  %s306_s14 = int_to_ptr.vmem [resolvable:$true] %s305_s14  ;;  %s304_s13 = int_to_ptr.hbm [resolvable:$true] %s303_s13 }
  0x38   : > { %s2116_s8 = sshra.s32 %s304_s13, 4  ;;  %s2123_s24 = scalar_lea.hbm %s2773_s2, 48  ;;  %s2117_s8 = int_to_ptr.hbm [resolvable:$true] %s2116_s8 }
  0x39   : > { %s2118_s19 = scalar_lea.hbm %s2117_s8, 24  ;;  %p2124_p10 = scmp.lt.s32.totalorder %s2117_s8, %s2773_s2 }
  0x3a   : > { %p2119_p1 = scmp.ne.s32.totalorder %s2117_s8, %s2118_s19  ;;  %p2125_p13 = scmp.lt.s32.totalorder %s2123_s24, %s2118_s19 }
  0x3c   : > { %p2121_p11 = pnand %p2119_p1, %p2030_p12  ;;  %p2126_p0 = por %p2125_p13, %p2124_p10 }
  0x3e   : > { %p2122_p2 = pneg %p2121_p11 }
  0x40   : > { %p2127_p3 = pnand %p2126_p0, %p2122_p2 }
  0x42   : > { %2130 = shalt.err (!%p2127_p3)
}
  0x43   : > { %1904 = dma.hbm_to_vmem [thread:$0]  (!%p2382_p9), %s304_s13, 384, %s306_s14, %s2392_s29  }
  0x44   : > { %314 = sbr.rel (%p2340_p8) target bundleno = 1831 (0x727), region = 48  ;;  %p2804_p12 = scmp.eq.s32.totalorder (!%p2340_p8), %s2318_s28, 0 }
  0x49   : > { %2191 = dma.done.wait (%p2804_p12), [#allocation7], 48   ;;  %p2805_p5 = pmov %p2804_p12 }
  0x4a   : > { %s321_s0 = sand.u32 1, %s2318_s28   ;;  %s2444_s9 = sand.u32 1, %s2212_s25  }
  0x4b   : > { %2193 = vsyncadd (%p2805_p5), [#allocation7], 4294967248  ;;  %s1857_s18 = smul.u32 72, %s2444_s9  ;;  %s322_s11 = scalar_lea.sflag [#allocation10], %s321_s0 }
  0x4d   : > { %s325_s16 = scalar_lea.vmem [#allocation9], %s1857_s18 }
  0x4e   : > { %2195 = dma.done.wait (%p2327_p4), %s322_s11, 1536  }
  0x4f   : > { %2197 = vsyncadd (%p2327_p4), %s322_s11, 4294965760  ;;  %s1858_s12 = smul.u32 24, %s2444_s9  ;;  %p2806_p8 = pmov %p2805_p5 }
  0x51   : > { %s2454_s29 = scalar_lea.vmem [#allocation11], %s1858_s12 }
  0x52   : > { %2199 = dma.done.wait (%p2806_p8), [#allocation13], 384   ;;  %p2807_p9 = pmov %p2805_p5 }
  0x53   : > { %v392_v0 = vld [vmem:[%s325_s16 + $0x40] sm:$0xff]  ;;  %v391_v1 = vld [vmem:[%s325_s16 + $0x38] sm:$0xff]  ;;  %v390_v2 = vld [vmem:[%s325_s16 + $0x30] sm:$0xff]  ;;  %vm393_vm0 = vcmask 588800   ;;  %s2227_s23 = smov 120   ;;  %vm423_vm1 = vcmask 736256  }
  0x54   : > { %2201 = vsyncadd (%p2807_p9), [#allocation13], 4294966912  ;;  %407 = vmatpush.msra.mxu0 %v392_v0  ;;  %v389_v3 = vld [vmem:[%s325_s16 + $0x28] sm:$0xff]  ;;  %v388_v4 = vld [vmem:[%s325_s16 + $0x20] sm:$0xff]  ;;  %s2228_s10 = smov 126   ;;  %s2229_s14 = smov 112  }
  0x55   : > { %v387_v5 = vld [vmem:[%s325_s16 + $0x18] sm:$0xff]  ;;  %v386_v6 = vld [vmem:[%s325_s16 + $0x10] sm:$0xff]  ;;  %v385_v7 = vld [vmem:[%s325_s16 + $0x8] sm:$0xff]  ;;  %s2230_s13 = smov 118   ;;  %s2231_s8 = smov 108   ;;  %vm459_vm2 = vcmask 367616  }
  0x56   : > { %408 = vmatpush.msra.mxu0 %v391_v1  ;;  %v384_v8 = vld [vmem:[%s325_s16] sm:$0xff]  ;;  %v2465_v11 = vld [vmem:[%s2775_s4] sm:$0xff]  ;;  %s2232_s19 = smov 117   ;;  %s2233_s20 = smov 96   ;;  %vm510_vm5 = vcmask 64512   ;;  %vm753_vm12 = vcmask 531456  }
  0x57   : > { %v382_v9 = vld [vmem:[#allocation12] sm:$0xff]  ;;  %v383_v10 = vld [vmem:[#allocation12 + $0x8] sm:$0xff]  ;;  %504 = vrot.lane.b32.xlu2 %v2465_v11, %s2227_s23  ;;  %s2234_s15 = smov 104   ;;  %s2235_s24 = smov 119   ;;  %vm815_vm13 = vcmask 130112   ;;  %vm847_vm14 = vcmask 195712  }
  0x58   : > { %409 = vmatpush.msra.mxu0 %v390_v2  ;;  %s2236_s17 = smov 72   ;;  %s2237_s3 = smov 110   ;;  %vm879_vm15 = vcmask 261312  }
  0x59   : > { %s2238_s0 = smov 80   ;;  %s2239_s18 = smov 127  }
  0x5a   : > { %410 = vmatpush.msra.mxu0 %v389_v3  ;;  %s2240_s11 = smov 88   ;;  %s2241_s30 = smov 109  }
  0x5b   : > { %s2242_s21 = smov 64  }
  0x5c   : > { %411 = vmatpush.msra.mxu0 %v388_v4 }
  0x5e   : > { %412 = vmatpush.msra.mxu0 %v387_v5 }
  0x60   : > { %413 = vmatpush.msra.mxu0 %v386_v6 }
  0x62   : > { %414 = vmatpush.msra.mxu0 %v385_v7 }
  0x64   : > { %415 = vmatpush.msra.mxu0 %v384_v8 }
  0x65   : > { %1815 = vmatmul.msk.f32.vlgmr.msra.gmra.mxu0 %vm393_vm0, %v382_v9 }
  0x6d   : > { %1816 = vmatmul.msk.f32.gmra.mxu0 %vm393_vm0, %v383_v10 }
  0xb1   : > { %v2483_v19 = vpop.permute.xlu2 %504 }
  0xe2   : > { %v417_v12 = vpop.f32.mrf.mxu0 }
  0xe3   : > { %424 = vst.msk [vmem:[#allocation2] sm:$0xff] %vm423_vm1, %v417_v12 }
  0xea   : > { %v426_v13 = vld [vmem:[#allocation2] sm:$0xff]  ;;  %v420_v14 = vpop.f32.mrf.mxu0 }
  0xeb   : > { %557 = vrot.lane.b32.xlu2 %v426_v13, %s2228_s10  ;;  %550 = vmatpush.msrb.mxu0 %v426_v13  ;;  %v428_v15 = vmul.f32 %v426_v13, %v426_v13  ;;  %425 = vst.msk [vmem:[#allocation2 + $0x8] sm:$0xff] %vm423_vm1, %v420_v14 }
  0xec   : > { %1818 = vmatmul.msk.f32.vlgmr.msrb.gmra.mxu0 %vm510_vm5, %v2465_v11 }
  0xed   : > { %v429_v16 = vsel %vm423_vm1, %v428_v15, 0.0 }
  0xee   : > { %430 = vadd.xlane.f32.xlu0 %v429_v16 }
  0xf2   : > { %v427_v17 = vld [vmem:[#allocation2 + $0x8] sm:$0xff] }
  0xf3   : > { %555 = vrot.lane.b32.xlu2 %v2465_v11, %s2229_s14  ;;  %v454_v18 = vmul.f32 %v427_v17, %v427_v17 }
  0xfb   : > { %613 = vrot.lane.b32.xlu2 %v426_v13, %s2230_s13 }
 0x102   : > { %456 = vrot.lane.b32.xlu0 %v454_v18, %s2231_s8 }
 0x103   : > { %641 = vrot.lane.b32.xlu2 %v426_v13, %s2232_s19 }
 0x10a   : > { %611 = vrot.lane.b32.xlu0 %v2465_v11, %s2233_s20 }
 0x10b   : > { %583 = vrot.lane.b32.xlu2 %v2465_v11, %s2234_s15  ;;  %s2243_s15 = smov 1e-12  }
 0x112   : > { %585 = vrot.lane.b32.xlu0 %v426_v13, %s2235_s24 }
 0x113   : > { %725 = vrot.lane.b32.xlu2 %v426_v13, %s2231_s8 }
 0x11a   : > { %695 = vrot.lane.b32.xlu0 %v2465_v11, %s2236_s17 }
 0x11b   : > { %667 = vrot.lane.b32.xlu2 %v2465_v11, %s2238_s0 }
 0x122   : > { %669 = vrot.lane.b32.xlu0 %v426_v13, %s2237_s3 }
 0x145   : > { %v2485_v20 = vpop.permute.xlu2 %557 }
 0x14d   : > { %v2487_v21 = vpop.permute.xlu2 %555 }
 0x155   : > { %v614_v22 = vpop.permute.xlu2 %613 }
 0x156   : > { %633 = vmatpush.msra.mxu2 %v614_v22 }
 0x15d   : > { %v642_v23 = vpop.permute.xlu2 %641 }
 0x15e   : > { %661 = vmatpush.msra.mxu3 %v642_v23 }
 0x161   : > { %v431_v24 = vpop.xlane.xlu0 %430 }
 0x162   : > { %v432_v25 = vrot.slane %v431_v24, 4 }
 0x164   : > { %v433_v26 = vadd.f32 %v432_v25, %v431_v24 }
 0x165   : > { %v2489_v27 = vpop.permute.xlu2 %583 }
 0x166   : > { %v434_v28 = vrot.slane %v433_v26, 2 }
 0x168   : > { %v435_v29 = vadd.f32 %v434_v28, %v433_v26 }
 0x169   : > { %v552_v24 = vpop.f32.mrf.mxu0 }
 0x16a   : > { %v436_v30 = vrot.slane %v435_v29, 1 }
 0x16c   : > { %v437_v31 = vadd.f32 %v436_v30, %v435_v29 }
 0x16d   : > { %v726_v32 = vpop.permute.xlu2 %725 }
 0x16e   : > { %1859 = vpush %v437_v31  ;;  %745 = vmatpush.msrb.mxu3 %v726_v32 }
 0x174   : > { %v457_v33 = vpop.permute.xlu0 %456 }
 0x175   : > { %v460_v34 = vsel %vm459_vm2, %v457_v33, 0.0  ;;  %v668_v60 = vpop.permute.xlu2 %667 }
 0x176   : > { %461 = vadd.xlane.f32.xlu1 %v460_v34 }
 0x17c   : > { %v612_v46 = vpop.permute.xlu0 %611 }
 0x17d   : > { %1821 = vmatmul.msk.f32.vlgmr.msra.gmra.mxu2 %vm510_vm5, %v612_v46 }
 0x184   : > { %v586_v54 = vpop.permute.xlu0 %585 }
 0x18c   : > { %v696_v55 = vpop.permute.xlu0 %695 }
 0x18f   : > { %507 = vrot.lane.b32.xlu1 %v426_v13, %s2239_s18 }
 0x194   : > { %v670_v58 = vpop.permute.xlu0 %669 }
 0x197   : > { %639 = vrot.lane.b32.xlu1 %v2465_v11, %s2240_s11 }
 0x19f   : > { %s1860_s16 = spop %1859  ;;  %697 = vrot.lane.b32.xlu1 %v426_v13, %s2241_s30 }
 0x1a0   : > { %v439_v35 = vstv %s1860_s16 }
 0x1a1   : > { %1986 = vrsqrt.f32 %v439_v35  ;;  %vm447_vm3 = vcmp.eq.f32.partialorder %v439_v35, inf  ;;  %v450_v43 = vand.u32 2147483648, %v439_v35  ;;  %vm449_vm4 = vcmp.eq.f32.partialorder %v439_v35, 0.0 }
 0x1a7   : > { %v1987_v36 = vpop.eup %1986  ;;  %723 = vrot.lane.b32.xlu1 %v2465_v11, %s2242_s21 }
 0x1a8   : > { %v441_v37 = vmul.f32 %v1987_v36, %v439_v35 }
 0x1aa   : > { %v442_v38 = vmul.f32 %v1987_v36, %v441_v37 }
 0x1ac   : > { %v443_v39 = vmul.f32 0.5, %v442_v38 }
 0x1ae   : > { %v444_v40 = vsub.f32 1.5, %v443_v39 }
 0x1af   : > { %757 = vrot.lane.b32.xlu1 %v427_v17, %s2231_s8 }
 0x1b0   : > { %v445_v41 = vmul.f32 %v1987_v36, %v444_v40 }
 0x1b2   : > { %v446_v42 = vmul.f32 %v445_v41, %v439_v35 }
 0x1b4   : > { %v448_v44 = vsel %vm447_vm3, %v439_v35, %v446_v42  ;;  %vm1082_vm3 = vcmask 261120  }
 0x1b5   : > { %v451_v45 = vsel %vm449_vm4, %v450_v43, %v448_v44  ;;  %vm943_vm4 = vcmask 392512  }
 0x1b6   : > { %1861 = vpush %v451_v45 }
 0x1e7   : > { %s1862_s23 = spop %1861 }
 0x1e8   : > { %s453_s17 = smax.f32 %s2243_s15, %s1862_s23  ;;  %s2247_s23 = smov 8  }
 0x1e9   : > { %v462_v47 = vpop.xlane.xlu1 %461 }
 0x1ea   : > { %v463_v48 = vrot.slane %v462_v47, 4 }
 0x1ec   : > { %v464_v49 = vadd.f32 %v463_v48, %v462_v47 }
 0x1ee   : > { %v465_v50 = vrot.slane %v464_v49, 2 }
 0x1f0   : > { %v466_v51 = vadd.f32 %v465_v50, %v464_v49 }
 0x1f2   : > { %v467_v52 = vrot.slane %v466_v51, 1 }
 0x1f4   : > { %v468_v53 = vadd.f32 %v467_v52, %v466_v51 }
 0x1f6   : > { %1863 = vpush %v468_v53 }
 0x200   : > { %v635_v29 = vpop.f32.mrf.mxu2 }
 0x201   : > { %v508_v56 = vpop.permute.xlu1 %507 }
 0x202   : > { %528 = vmatpush.msra.mxu1 %v508_v56 }
 0x203   : > { %1817 = vmatmul.msk.f32.vlgmr.msra.gmra.mxu1 %vm510_vm5, %v2483_v19 }
 0x204   : > { %577 = vmatpush.msrb.mxu1 %v2485_v20 }
 0x206   : > { %605 = vmatpush.msra.mxu1 %v586_v54 }
 0x209   : > { %v640_v57 = vpop.permute.xlu1 %639 }
 0x20a   : > { %1822 = vmatmul.msk.f32.vlgmr.msra.gmra.mxu3 %vm510_vm5, %v640_v57 }
 0x20b   : > { %1819 = vmatmul.msk.f32.vlgmr.msrb.gmra.mxu1 %vm510_vm5, %v2487_v21 }
 0x20c   : > { %689 = vmatpush.msrb.mxu1 %v670_v58  ;;  %v2551_v58 = vld [vmem:[%s2454_s29 + $0x10] sm:$0xff] }
 0x20d   : > { %1083 = vst.msk [vmem:[#allocation4 + $0x10] sm:$0xff] %vm1082_vm3, %v2551_v58 }
 0x211   : > { %v698_v59 = vpop.permute.xlu1 %697 }
 0x212   : > { %717 = vmatpush.msrb.mxu2 %v698_v59 }
 0x213   : > { %1820 = vmatmul.msk.f32.vlgmr.msra.gmra.mxu1 %vm510_vm5, %v2489_v27  ;;  %1824 = vmatmul.msk.f32.vlgmr.msrb.gmra.mxu2 %vm510_vm5, %v696_v55 }
 0x219   : > { %v724_v61 = vpop.permute.xlu1 %723 }
 0x21a   : > { %1825 = vmatmul.msk.f32.vlgmr.msrb.gmra.mxu3 %vm510_vm5, %v724_v61  ;;  %v2562_v61 = vld [vmem:[%s2454_s29 + $0x8] sm:$0xff] }
 0x21b   : > { %1823 = vmatmul.msk.f32.vlgmr.msrb.gmra.mxu1 %vm510_vm5, %v668_v60  ;;  %v2554_v60 = vld [vmem:[%s2454_s29] sm:$0xff]  ;;  %s2253_s29 = smov 92  }
 0x221   : > { %v2512_v62 = vpop.permute.xlu1 %757 }
 0x222   : > { %1826 = vmatpush.xpose.msk.msra.mxu1 %vm459_vm2, %v2512_v62  ;;  %1828 = vmatpush.xpose.msk.msra.mxu2 %vm459_vm2, %v2512_v62 }
 0x223   : > { %1830 = vmatpush.xpose.msk.msra.mxu3 %vm459_vm2, %v2512_v62  ;;  %1832 = vmatpush.xpose.msk.msra.mxu0 %vm459_vm2, %v2512_v62 }
 0x226   : > { %1834 = vmatpush.xpose.msk.msrb.mxu1 %vm459_vm2, %v2512_v62  ;;  %1836 = vmatpush.xpose.msk.msrb.mxu2 %vm459_vm2, %v2512_v62 }
 0x227   : > { %1838 = vmatpush.xpose.msk.msrb.mxu3 %vm459_vm2, %v2512_v62  ;;  %1840 = vmatpush.xpose.msk.msrb.mxu0 %vm459_vm2, %v2512_v62  ;;  %s1864_s14 = spop %1863 }
 0x228   : > { %v470_v63 = vstv %s1864_s14  ;;  %s2248_s14 = smov 48  }
 0x229   : > { %1988 = vrsqrt.f32 %v470_v63  ;;  %vm478_vm6 = vcmp.eq.f32.partialorder %v470_v63, inf  ;;  %v481_v7 = vand.u32 2147483648, %v470_v63  ;;  %vm480_vm7 = vcmp.eq.f32.partialorder %v470_v63, 0.0 }
 0x22f   : > { %v1989_v0 = vpop.eup %1988 }
 0x230   : > { %v472_v1 = vmul.f32 %v1989_v0, %v470_v63 }
 0x232   : > { %v473_v2 = vmul.f32 %v1989_v0, %v472_v1 }
 0x234   : > { %v474_v3 = vmul.f32 0.5, %v473_v2 }
 0x236   : > { %v475_v4 = vsub.f32 1.5, %v474_v3 }
 0x238   : > { %v476_v5 = vmul.f32 %v1989_v0, %v475_v4 }
 0x23a   : > { %v477_v6 = vmul.f32 %v476_v5, %v470_v63 }
 0x23c   : > { %v479_v8 = vsel %vm478_vm6, %v470_v63, %v477_v6  ;;  %vm1007_vm6 = vcmask 523712  }
 0x23d   : > { %v482_v9 = vsel %vm480_vm7, %v481_v7, %v479_v8  ;;  %vm1039_vm7 = vcmask 589312  }
 0x23e   : > { %1865 = vpush %v482_v9 }
 0x26f   : > { %s1866_s20 = spop %1865 }
 0x270   : > { %s484_s0 = smax.f32 %s2243_s15, %s1866_s20  ;;  %s2249_s20 = smov 40  }
 0x271   : > { %s485_s11 = smul.f32 %s484_s0, %s453_s17  ;;  %s2250_s15 = smov 56  }
 0x272   : > { %s2251_s17 = smov 90   ;;  %s2252_s0 = smov 91  }
 0x273   : > { %v486_v10 = vstv %s485_s11 }
 0x274   : > { %1990 = vrcp.f32 %v486_v10  ;;  %v498_v15 = vand.u32 2147483648, %v486_v10  ;;  %v496_v17 = vand.u32 2147483647, %v486_v10  ;;  %vm492_vm9 = vweird.f32 %v486_v10 }
 0x276   : > { %v499_v19 = vor.u32 1.1754944e-38, %v498_v15  ;;  %vm497_vm11 = vcmp.eq.f32.partialorder %v496_v17, 8.507059e+37 }
 0x27a   : > { %v1991_v12 = vpop.eup %1990 }
 0x27b   : > { %v488_v13 = vmul.f32 %v1991_v12, %v486_v10  ;;  %vm493_vm8 = vweird.f32 %v1991_v12 }
 0x27c   : > { %vm494_vm10 = vmor %vm492_vm9, %vm493_vm8  ;;  %vm1222_vm8 = vcmask 744448   ;;  %vm1201_vm9 = vcmask 752640  }
 0x27d   : > { %v489_v14 = vsub.f32 1.0, %v488_v13 }
 0x27f   : > { %v490_v16 = vmul.f32 %v1991_v12, %v489_v14 }
 0x280   : > { %v530_v22 = vpop.f32.mrf.mxu1 }
 0x281   : > { %v491_v18 = vadd.f32 %v1991_v12, %v490_v16  ;;  %v553_v25 = vadd.f32 %v552_v24, %v530_v22 }
 0x283   : > { %v495_v20 = vsel %vm494_vm10, %v1991_v12, %v491_v18  ;;  %vm1180_vm10 = vcmask 883712  }
 0x284   : > { %v500_v21 = vsel %vm497_vm11, %v499_v19, %v495_v20  ;;  %vm1159_vm11 = vcmask 891904  }
 0x285   : > { %1867 = vpush %v500_v21 }
 0x288   : > { %v579_v23 = vpop.f32.mrf.mxu1 }
 0x289   : > { %v582_v27 = vadd.f32 %v579_v23, %v553_v25 }
 0x28d   : > { %v663_v31 = vpop.f32.mrf.mxu3 }
 0x290   : > { %v607_v26 = vpop.f32.mrf.mxu1 }
 0x291   : > { %v610_v28 = vadd.f32 %v607_v26, %v582_v27 }
 0x293   : > { %v638_v30 = vadd.f32 %v635_v29, %v610_v28 }
 0x295   : > { %v666_v33 = vadd.f32 %v663_v31, %v638_v30 }
 0x296   : > { %v719_v35 = vpop.f32.mrf.mxu2 }
 0x298   : > { %v691_v32 = vpop.f32.mrf.mxu1 }
 0x299   : > { %v694_v34 = vadd.f32 %v691_v32, %v666_v33 }
 0x29b   : > { %v722_v36 = vadd.f32 %v719_v35, %v694_v34 }
 0x29d   : > { %v747_v37 = vpop.f32.mrf.mxu3 }
 0x29e   : > { %v750_v38 = vadd.f32 %v747_v37, %v722_v36 }
 0x2b6   : > { %s1868_s16 = spop %1867 }
 0x2b7   : > { %v751_v39 = vstv %s1868_s16  ;;  %s381_s16 = scalar_lea.vmem [#allocation15], %s1858_s12 }
 0x2b8   : > { %v752_v40 = vmul.f32 %v751_v39, %v750_v38 }
 0x2ba   : > { %754 = vst.msk [vmem:[#allocation2] sm:$0xff] %vm753_vm12, %v752_v40  ;;  %vm1138_vm12 = vcmask 900096  }
 0x2c1   : > { %v849_v41 = vld [vmem:[#allocation2] sm:$0xff] }
 0x2c2   : > { %851 = vrot.lane.b32.xlu1 %v849_v41, %s2235_s24  ;;  %819 = vrot.lane.b32.xlu2 %v849_v41, %s2228_s10  ;;  %s2246_s24 = smov 24  }
 0x2c3   : > { %787 = vrot.lane.b32.xlu0 %v849_v41, %s2239_s18  ;;  %1827 = vmatmul.msk.f32.vlgmr.msra.gmra.mxu1 %vm459_vm2, %v849_v41 }
 0x2c4   : > { %1842 = vmatpush.xpose.msk.msra.mxu1 %vm459_vm2, %v2512_v62 }
 0x2ca   : > { %947 = vrot.lane.b32.xlu1 %v849_v41, %s2237_s3  ;;  %883 = vrot.lane.b32.xlu2 %v849_v41, %s2230_s13  ;;  %s2244_s13 = smov 16  }
 0x2cb   : > { %915 = vrot.lane.b32.xlu0 %v849_v41, %s2232_s19  ;;  %s2245_s19 = smov 32  }
 0x2d2   : > { %1011 = vrot.lane.b32.xlu2 %v849_v41, %s2231_s8 }
 0x2d3   : > { %979 = vrot.lane.b32.xlu0 %v849_v41, %s2241_s30 }
 0x31c   : > { %v820_v42 = vpop.permute.xlu2 %819 }
 0x31d   : > { %1831 = vmatmul.msk.f32.vlgmr.msra.gmra.mxu3 %vm459_vm2, %v820_v42 }
 0x324   : > { %v884_v43 = vpop.permute.xlu2 %883 }
 0x325   : > { %1835 = vmatmul.msk.f32.vlgmr.msrb.gmra.mxu1 %vm459_vm2, %v884_v43 }
 0x32c   : > { %v1012_v44 = vpop.permute.xlu2 %1011 }
 0x32d   : > { %1843 = vmatmul.msk.f32.vlgmr.msra.gmra.mxu1 %vm459_vm2, %v1012_v44 }
 0x334   : > { %v852_v45 = vpop.permute.xlu1 %851 }
 0x335   : > { %v788_v46 = vpop.permute.xlu0 %787  ;;  %1833 = vmatmul.msk.f32.vlgmr.msra.gmra.mxu0 %vm459_vm2, %v852_v45 }
 0x336   : > { %1829 = vmatmul.msk.f32.vlgmr.msra.gmra.mxu2 %vm459_vm2, %v788_v46 }
 0x33c   : > { %v948_v47 = vpop.permute.xlu1 %947 }
 0x33d   : > { %v916_v48 = vpop.permute.xlu0 %915  ;;  %1839 = vmatmul.msk.f32.vlgmr.msrb.gmra.mxu3 %vm459_vm2, %v948_v47 }
 0x33e   : > { %1837 = vmatmul.msk.f32.vlgmr.msrb.gmra.mxu2 %vm459_vm2, %v916_v48 }
 0x340   : > { %v781_v49 = vpop.f32.mrf.mxu1 }
 0x341   : > { %784 = vst.msk [vmem:[#allocation3] sm:$0xff] %vm510_vm5, %v781_v49  ;;  %vm975_vm5 = vcmask 458112  }
 0x345   : > { %v980_v50 = vpop.permute.xlu0 %979 }
 0x346   : > { %1841 = vmatmul.msk.f32.vlgmr.msrb.gmra.mxu0 %vm459_vm2, %v980_v50  ;;  %vm911_vm2 = vcmask 326912  }
 0x3a0   : > { %v840_v51 = vpop.f32.mrf.mxu3 }
 0x3a1   : > { %844 = vrot.lane.b32.xlu0 %v840_v51, %s2244_s13  ;;  %s1679_s13 = sshll.u32 %s381_s16, 4  ;;  %s1680_s13 = int_to_ptr.vmem [resolvable:$true] %s1679_s13 }
 0x3a2   : > { %v904_v52 = vpop.f32.mrf.mxu1 }
 0x3a3   : > { %908 = vrot.lane.b32.xlu1 %v904_v52, %s2245_s19  ;;  %s1666_s19 = scalar_lea.sflag [#allocation8], %s2444_s9 }
 0x3aa   : > { %v1032_v59 = vpop.f32.mrf.mxu1 }
 0x3b2   : > { %v872_v53 = vpop.f32.mrf.mxu0 }
 0x3b3   : > { %876 = vrot.lane.b32.xlu2 %v872_v53, %s2246_s24 }
 0x3b9   : > { %v808_v54 = vpop.f32.mrf.mxu2 }
 0x3ba   : > { %812 = vrot.lane.b32.xlu1 %v808_v54, %s2247_s23 }
 0x3c0   : > { %v968_v55 = vpop.f32.mrf.mxu3 }
 0x3c1   : > { %v936_v56 = vpop.f32.mrf.mxu2  ;;  %972 = vrot.lane.b32.xlu2 %v968_v55, %s2248_s14 }
 0x3c2   : > { %940 = vrot.lane.b32.xlu0 %v936_v56, %s2249_s20  ;;  %s2166_s20 = scalar_lea.hbm %s2778_s7, 48 }
 0x3c3   : > { %v1000_v57 = vpop.f32.mrf.mxu0 }
 0x3c4   : > { %1004 = vrot.lane.b32.xlu1 %v1000_v57, %s2250_s15 }
 0x3c9   : > { %1178 = vrot.lane.b32.xlu2 %v2551_v58, %s2231_s8 }
 0x3ca   : > { %1036 = vrot.lane.b32.xlu0 %v1032_v59, %s2242_s21  ;;  %s2255_s21 = smov 19  }
 0x3cc   : > { %1237 = vrot.lane.b32.xlu1 %v2554_v60, %s2251_s17 }
 0x3d1   : > { %1111 = vrot.lane.b32.xlu2 %v2554_v60, %s2228_s10 }
 0x3d2   : > { %1239 = vrot.lane.b32.xlu0 %v2562_v61, %s2251_s17 }
 0x3d4   : > { %1241 = vrot.lane.b32.xlu1 %v2551_v58, %s2251_s17 }
 0x3da   : > { %1216 = vrot.lane.b32.xlu0 %v2554_v60, %s2252_s0 }
 0x3dc   : > { %1218 = vrot.lane.b32.xlu1 %v2562_v61, %s2252_s0 }
 0x3e2   : > { %1220 = vrot.lane.b32.xlu0 %v2551_v58, %s2252_s0 }
 0x3e4   : > { %1195 = vrot.lane.b32.xlu1 %v2554_v60, %s2253_s29 }
 0x3ea   : > { %1197 = vrot.lane.b32.xlu0 %v2562_v61, %s2253_s29 }
 0x3ec   : > { %1199 = vrot.lane.b32.xlu1 %v2551_v58, %s2253_s29 }
 0x3f2   : > { %1174 = vrot.lane.b32.xlu0 %v2554_v60, %s2231_s8 }
 0x3f4   : > { %1176 = vrot.lane.b32.xlu1 %v2562_v61, %s2231_s8 }
 0x3fa   : > { %1153 = vrot.lane.b32.xlu0 %v2554_v60, %s2241_s30 }
 0x3fc   : > { %1155 = vrot.lane.b32.xlu1 %v2562_v61, %s2241_s30 }
 0x402   : > { %1157 = vrot.lane.b32.xlu0 %v2551_v58, %s2241_s30 }
 0x404   : > { %1132 = vrot.lane.b32.xlu1 %v2554_v60, %s2237_s3 }
 0x40a   : > { %1134 = vrot.lane.b32.xlu0 %v2562_v61, %s2237_s3 }
 0x40c   : > { %1136 = vrot.lane.b32.xlu1 %v2551_v58, %s2237_s3 }
 0x40d   : > { %v877_v1 = vpop.permute.xlu2 %876 }
 0x412   : > { %1113 = vrot.lane.b32.xlu0 %v2562_v61, %s2228_s10 }
 0x413   : > { %v845_v63 = vpop.permute.xlu0 %844 }
 0x414   : > { %1115 = vrot.lane.b32.xlu1 %v2551_v58, %s2228_s10 }
 0x415   : > { %v909_v62 = vpop.permute.xlu1 %908 }
 0x41a   : > { %1092 = vrot.lane.b32.xlu0 %v2562_v61, %s2239_s18 }
 0x41b   : > { %v973_v3 = vpop.permute.xlu2 %972 }
 0x41c   : > { %1094 = vrot.lane.b32.xlu1 %v2551_v58, %s2239_s18 }
 0x423   : > { %v1179_v16 = vpop.permute.xlu2 %1178 }
 0x424   : > { %1188 = vst.msk [vmem:[#allocation4 + $0x88] sm:$0xff] %vm1082_vm3, %v1179_v16 }
 0x42b   : > { %v1268_v31 = vld [vmem:[#allocation4 + $0x88] sm:$0xff]  ;;  %v1112_v42 = vpop.permute.xlu2 %1111 }
 0x42c   : > { %v813_v0 = vpop.permute.xlu1 %812 }
 0x42d   : > { %816 = vst.msk [vmem:[#allocation3] sm:$0xff] %vm815_vm13, %v813_v0  ;;  %vm1117_vm13 = vcmask 1031168  }
 0x42e   : > { %848 = vst.msk [vmem:[#allocation3] sm:$0xff] %vm847_vm14, %v845_v63  ;;  %vm1096_vm14 = vcmask 1039360  }
 0x42f   : > { %880 = vst.msk [vmem:[#allocation3] sm:$0xff] %vm879_vm15, %v877_v1 }
 0x430   : > { %912 = vst.msk [vmem:[#allocation3] sm:$0xff] %vm911_vm2, %v909_v62 }
 0x434   : > { %v941_v2 = vpop.permute.xlu0 %940 }
 0x435   : > { %944 = vst.msk [vmem:[#allocation3] sm:$0xff] %vm943_vm4, %v941_v2  ;;  %v1253_v2 = vld [vmem:[#allocation4 + $0x10] sm:$0xff] }
 0x436   : > { %v1005_v4 = vpop.permute.xlu1 %1004  ;;  %976 = vst.msk [vmem:[#allocation3] sm:$0xff] %vm975_vm5, %v973_v3 }
 0x437   : > { %1008 = vst.msk [vmem:[#allocation3] sm:$0xff] %vm1007_vm6, %v1005_v4 }
 0x43c   : > { %v1037_v5 = vpop.permute.xlu0 %1036 }
 0x43d   : > { %1040 = vst.msk [vmem:[#allocation3] sm:$0xff] %vm1039_vm7, %v1037_v5 }
 0x43e   : > { %v1238_v6 = vpop.permute.xlu1 %1237 }
 0x444   : > { %v1240_v7 = vpop.permute.xlu0 %1239  ;;  %v2608_v8 = vld [vmem:[#allocation3] sm:$0xff] }
 0x445   : > { %v1042_v9 = vmul.f32 %v2608_v8, %v2608_v8  ;;  %v1243_v10 = vsel %vm423_vm1, %v1238_v6, %v1240_v7 }
 0x446   : > { %v1242_v12 = vpop.permute.xlu1 %1241  ;;  %1288 = vmatpush.msra.mxu2 %v1243_v10 }
 0x447   : > { %v1043_v13 = vsel %vm393_vm0, %v1042_v9, 0.0  ;;  %v1244_v14 = vsel %vm423_vm1, %v1240_v7, %v1242_v12  ;;  %1250 = vst.msk [vmem:[#allocation4 + $0xd0] sm:$0xff] %vm1082_vm3, %v1242_v12 }
 0x448   : > { %1044 = vadd.xlane.f32.xlu2 %v1043_v13  ;;  %1308 = vmatpush.msra.mxu3 %v1244_v14 }
 0x44c   : > { %v1217_v15 = vpop.permute.xlu0 %1216 }
 0x44e   : > { %v1219_v17 = vpop.permute.xlu1 %1218  ;;  %v1277_v18 = vld [vmem:[#allocation4 + $0xd0] sm:$0xff] }
 0x44f   : > { %v1223_v19 = vsel %vm1222_vm8, %v1217_v15, %v1219_v17  ;;  %1328 = vmatpush.msra.mxu0 %v1277_v18 }
 0x450   : > { %1289 = vmatpush.msra.mxu2 %v1223_v19 }
 0x454   : > { %v1221_v20 = vpop.permute.xlu0 %1220 }
 0x455   : > { %1230 = vst.msk [vmem:[#allocation4 + $0xb8] sm:$0xff] %vm1082_vm3, %v1221_v20  ;;  %v1224_v21 = vsel %vm1222_vm8, %v1219_v17, %v1221_v20 }
 0x456   : > { %v1196_v22 = vpop.permute.xlu1 %1195  ;;  %1309 = vmatpush.msra.mxu3 %v1224_v21 }
 0x45c   : > { %v1198_v23 = vpop.permute.xlu0 %1197  ;;  %v1274_v24 = vld [vmem:[#allocation4 + $0xb8] sm:$0xff] }
 0x45d   : > { %v1202_v25 = vsel %vm1201_vm9, %v1196_v22, %v1198_v23  ;;  %1329 = vmatpush.msra.mxu0 %v1274_v24 }
 0x45e   : > { %v1200_v26 = vpop.permute.xlu1 %1199  ;;  %1290 = vmatpush.msra.mxu2 %v1202_v25  ;;  %v2254_v25 = vmov 0.0  }
 0x45f   : > { %v1203_v27 = vsel %vm1201_vm9, %v1198_v23, %v1200_v26  ;;  %1209 = vst.msk [vmem:[#allocation4 + $0xa0] sm:$0xff] %vm1082_vm3, %v1200_v26  ;;  %v1344_v26 = vld [vmem:[#allocation6] sm:$0x7] }
 0x460   : > { %1310 = vmatpush.msra.mxu3 %v1203_v27  ;;  %1090 = vrot.lane.b32.xlu2 %v2554_v60, %s2239_s18  ;;  %1355 = vst [vmem:[#allocation5] sm:$0xff] %v2254_v25  ;;  %v1348_v27 = vperm.slane %v1344_v26, 2 }
 0x464   : > { %v1175_v28 = vpop.permute.xlu0 %1174 }
 0x466   : > { %v1177_v29 = vpop.permute.xlu1 %1176  ;;  %v1271_v30 = vld [vmem:[#allocation4 + $0xa0] sm:$0xff] }
 0x467   : > { %v1181_v32 = vsel %vm1180_vm10, %v1175_v28, %v1177_v29  ;;  %v1182_v33 = vsel %vm1180_vm10, %v1177_v29, %v1179_v16  ;;  %1330 = vmatpush.msra.mxu0 %v1271_v30 }
 0x468   : > { %1311 = vmatpush.msra.mxu3 %v1182_v33  ;;  %1291 = vmatpush.msra.mxu2 %v1181_v32  ;;  %v1347_v32 = vperm.slane %v1344_v26, 1 }
 0x469   : > { %1331 = vmatpush.msra.mxu0 %v1268_v31  ;;  %v1346_v31 = vperm.slane %v1344_v26, 0 }
 0x46c   : > { %v1154_v34 = vpop.permute.xlu0 %1153 }
 0x46e   : > { %v1156_v35 = vpop.permute.xlu1 %1155 }
 0x46f   : > { %v1160_v36 = vsel %vm1159_vm11, %v1154_v34, %v1156_v35 }
 0x470   : > { %1292 = vmatpush.msra.mxu2 %v1160_v36 }
 0x474   : > { %v1158_v37 = vpop.permute.xlu0 %1157 }
 0x475   : > { %1167 = vst.msk [vmem:[#allocation4 + $0x70] sm:$0xff] %vm1082_vm3, %v1158_v37  ;;  %v1161_v38 = vsel %vm1159_vm11, %v1156_v35, %v1158_v37 }
 0x476   : > { %1312 = vmatpush.msra.mxu3 %v1161_v38  ;;  %v1133_v39 = vpop.permute.xlu1 %1132 }
 0x47c   : > { %v1135_v40 = vpop.permute.xlu0 %1134  ;;  %v1265_v47 = vld [vmem:[#allocation4 + $0x70] sm:$0xff] }
 0x47d   : > { %v1139_v41 = vsel %vm1138_vm12, %v1133_v39, %v1135_v40  ;;  %1332 = vmatpush.msra.mxu0 %v1265_v47 }
 0x47e   : > { %1293 = vmatpush.msra.mxu2 %v1139_v41  ;;  %v1137_v45 = vpop.permute.xlu1 %1136 }
 0x47f   : > { %1146 = vst.msk [vmem:[#allocation4 + $0x58] sm:$0xff] %vm1082_vm3, %v1137_v45  ;;  %v1140_v46 = vsel %vm1138_vm12, %v1135_v40, %v1137_v45 }
 0x480   : > { %1313 = vmatpush.msra.mxu3 %v1140_v46 }
 0x484   : > { %v1114_v43 = vpop.permute.xlu0 %1113 }
 0x485   : > { %v1118_v44 = vsel %vm1117_vm13, %v1112_v42, %v1114_v43 }
 0x486   : > { %1294 = vmatpush.msra.mxu2 %v1118_v44  ;;  %v1116_v48 = vpop.permute.xlu1 %1115  ;;  %v1262_v49 = vld [vmem:[#allocation4 + $0x58] sm:$0xff] }
 0x487   : > { %v1119_v50 = vsel %vm1117_vm13, %v1114_v43, %v1116_v48  ;;  %1125 = vst.msk [vmem:[#allocation4 + $0x40] sm:$0xff] %vm1082_vm3, %v1116_v48  ;;  %1333 = vmatpush.msra.mxu0 %v1262_v49 }
 0x488   : > { %1314 = vmatpush.msra.mxu3 %v1119_v50 }
 0x48c   : > { %v1093_v52 = vpop.permute.xlu0 %1092 }
 0x48e   : > { %v1095_v53 = vpop.permute.xlu1 %1094  ;;  %v1259_v54 = vld [vmem:[#allocation4 + $0x40] sm:$0xff] }
 0x48f   : > { %1104 = vst.msk [vmem:[#allocation4 + $0x28] sm:$0xff] %vm1082_vm3, %v1095_v53  ;;  %v1098_v55 = vsel %vm1096_vm14, %v1093_v52, %v1095_v53  ;;  %1334 = vmatpush.msra.mxu0 %v1259_v54 }
 0x490   : > { %1315 = vmatpush.msra.mxu3 %v1098_v55 }
 0x492   : > { %1316 = vmatpush.msra.mxu3 %v2562_v61 }
 0x496   : > { %v1256_v1 = vld [vmem:[#allocation4 + $0x28] sm:$0xff] }
 0x497   : > { %1335 = vmatpush.msra.mxu0 %v1256_v1 }
 0x499   : > { %1336 = vmatpush.msra.mxu0 %v1253_v2 }
 0x4bb   : > { %v1045_v51 = vpop.xlane.xlu2 %1044 }
 0x4bc   : > { %1992 = vrsqrt.f32 %v1045_v51  ;;  %vm1053_vm15 = vcmp.eq.f32.partialorder %v1045_v51, inf  ;;  %v1056_v6 = vand.u32 2147483648, %v1045_v51  ;;  %vm1055_vm2 = vcmp.eq.f32.partialorder %v1045_v51, 0.0 }
 0x4c2   : > { %v1993_v56 = vpop.eup %1992 }
 0x4c3   : > { %v1047_v57 = vmul.f32 %v1993_v56, %v1045_v51  ;;  %v1091_v59 = vpop.permute.xlu2 %1090 }
 0x4c4   : > { %v1097_v62 = vsel %vm1096_vm14, %v1091_v59, %v1093_v52 }
 0x4c5   : > { %v1048_v63 = vmul.f32 %v1993_v56, %v1047_v57  ;;  %1295 = vmatpush.msra.mxu2 %v1097_v62 }
 0x4c7   : > { %v1049_v0 = vmul.f32 0.5, %v1048_v63  ;;  %1296 = vmatpush.msra.mxu2 %v2554_v60 }
 0x4c9   : > { %v1050_v3 = vsub.f32 1.5, %v1049_v0 }
 0x4cb   : > { %v1051_v4 = vmul.f32 %v1993_v56, %v1050_v3 }
 0x4cd   : > { %v1052_v5 = vmul.f32 %v1051_v4, %v1045_v51 }
 0x4cf   : > { %v1054_v7 = vsel %vm1053_vm15, %v1045_v51, %v1052_v5  ;;  %vm1357_vm15 = vcmask 703488  }
 0x4d0   : > { %v1057_v9 = vsel %vm1055_vm2, %v1056_v6, %v1054_v7  ;;  %1358 = vst.msk [vmem:[#allocation5 + $0x10] sm:$0xff] %vm1357_vm15, %v2254_v25  ;;  %vm1374_vm2 = vcmask 1047704  }
 0x4d1   : > { %v1059_v10 = vmax.f32 %v1057_v9, 1e-12 }
 0x4d3   : > { %1994 = vrcp.f32 %v1059_v10  ;;  %v1071_v15 = vand.u32 2147483648, %v1059_v10  ;;  %v1069_v17 = vand.u32 2147483647, %v1059_v10  ;;  %vm1065_vm5 = vweird.f32 %v1059_v10 }
 0x4d5   : > { %v1072_v19 = vor.u32 1.1754944e-38, %v1071_v15  ;;  %vm1070_vm7 = vcmp.eq.f32.partialorder %v1069_v17, 8.507059e+37 }
 0x4d9   : > { %v1995_v12 = vpop.eup %1994 }
 0x4da   : > { %v1061_v13 = vmul.f32 %v1995_v12, %v1059_v10  ;;  %vm1066_vm4 = vweird.f32 %v1995_v12 }
 0x4db   : > { %vm1067_vm6 = vmor %vm1065_vm5, %vm1066_vm4  ;;  %vm1368_vm4 = vcmask 154624   ;;  %vm1377_vm5 = vcmask 416768  }
 0x4dc   : > { %v1062_v14 = vsub.f32 1.0, %v1061_v13 }
 0x4de   : > { %v1063_v16 = vmul.f32 %v1995_v12, %v1062_v14 }
 0x4e0   : > { %v1064_v18 = vadd.f32 %v1995_v12, %v1063_v16 }
 0x4e2   : > { %v1068_v20 = vsel %vm1067_vm6, %v1995_v12, %v1064_v18 }
 0x4e3   : > { %v1073_v21 = vsel %vm1070_vm7, %v1072_v19, %v1068_v20  ;;  %v1573_v19 = vld [vmem:[%s2777_s6] sm:$0xff] }
 0x4e4   : > { %v1074_v22 = vmul.f32 0.5, %v1073_v21 }
 0x4e6   : > { %v1075_v23 = vmul.f32 %v1074_v22, %v2608_v8  ;;  %v2256_v22 = vmov 0  }
 0x4e7   : > { %1984 = vset.pattern.permute.xlu2 %v2256_v22  ;;  %1985 = vset.pattern.permute.xlu0 %v2256_v22 }
 0x4e8   : > { %v1076_v24 = vadd.f32 %v1075_v23, %v2465_v11 }
 0x4ea   : > { %1844 = vmatmul.msk.f32.vlgmr.msra.gmra.mxu2 %vm393_vm0, %v1076_v24  ;;  %1845 = vmatmul.msk.f32.vlgmr.msra.gmra.mxu3 %vm393_vm0, %v1076_v24 }
 0x4eb   : > { %1846 = vmatmul.msk.f32.vlgmr.msra.gmra.mxu0 %vm393_vm0, %v1076_v24 }
 0x568   : > { %v1338_v28 = vpop.f32.mrf.mxu0 }
 0x569   : > { %v1343_v29 = vmax.f32 %v1338_v28, 0.0 }
 0x56b   : > { %v1354_v30 = vmul.f32 %v1348_v27, %v1343_v29 }
 0x56d   : > { %1366 = vrot.lane.b32.xlu1 %v1354_v30, %s2255_s21  ;;  %v1298_v8 = vpop.f32.mrf.mxu2  ;;  %v1318_v33 = vpop.f32.mrf.mxu3  ;;  %v1545_v30 = vld [vmem:[#allocation14] sm:$0xff] }
 0x56e   : > { %v1341_v11 = vmax.f32 %v1298_v8, 0.0  ;;  %v1342_v34 = vmax.f32 %v1318_v33, 0.0 }
 0x570   : > { %v1352_v35 = vmul.f32 %v1346_v31, %v1341_v11  ;;  %v1353_v36 = vmul.f32 %v1347_v32, %v1342_v34 }
 0x572   : > { %1364 = vrot.lane.b32.xlu0 %v1353_v36, %s2255_s21  ;;  %1362 = vrot.lane.b32.xlu2 %v1352_v35, %s2255_s21 }
 0x5cc   : > { %v1363_v37 = vpop.permute.xlu2 %1362 }
 0x5cd   : > { %1375 = vst.msk [vmem:[#allocation5] sm:$0xff] %vm1374_vm2, %v1363_v37 }
 0x5d4   : > { %v2646_v38 = vld [vmem:[#allocation5] sm:$0xff] }
 0x5d5   : > { %1531 = vrot.lane.b32.xlu1 %v2646_v38, %s2251_s17 }
 0x5dd   : > { %1511 = vrot.lane.b32.xlu1 %v2646_v38, %s2252_s0 }
 0x5df   : > { %v1367_v39 = vpop.permute.xlu1 %1366 }
 0x5e4   : > { %v1365_v40 = vpop.permute.xlu0 %1364 }
 0x5e5   : > { %v2652_v41 = vsel %vm1368_vm4, %v1363_v37, %v1365_v40  ;;  %v1370_v42 = vsel %vm1368_vm4, %v1365_v40, %v1367_v39  ;;  %1491 = vrot.lane.b32.xlu1 %v2646_v38, %s2253_s29 }
 0x5e6   : > { %1533 = vrot.lane.b32.xlu2 %v2652_v41, %s2251_s17  ;;  %1378 = vst.msk [vmem:[#allocation5 + $0x10] sm:$0xff] %vm1377_vm5, %v1370_v42 }
 0x5ed   : > { %1471 = vrot.lane.b32.xlu1 %v2646_v38, %s2231_s8  ;;  %v1381_v43 = vld [vmem:[#allocation5 + $0x10] sm:$0xff] }
 0x5ee   : > { %1384 = vst.msk [vmem:[#allocation4 + $0x10] sm:$0xff] %vm1082_vm3, %v1381_v43  ;;  %1535 = vrot.lane.b32.xlu0 %v1381_v43, %s2251_s17  ;;  %1515 = vrot.lane.b32.xlu2 %v1381_v43, %s2252_s0 }
 0x5f5   : > { %1513 = vrot.lane.b32.xlu1 %v2652_v41, %s2252_s0  ;;  %v1548_v8 = vld [vmem:[#allocation4 + $0x10] sm:$0xff] }
 0x5f6   : > { %1493 = vrot.lane.b32.xlu0 %v2652_v41, %s2253_s29  ;;  %1473 = vrot.lane.b32.xlu2 %v2652_v41, %s2231_s8 }
 0x5fd   : > { %1495 = vrot.lane.b32.xlu1 %v1381_v43, %s2253_s29 }
 0x5fe   : > { %1475 = vrot.lane.b32.xlu0 %v1381_v43, %s2231_s8  ;;  %1453 = vrot.lane.b32.xlu2 %v2652_v41, %s2241_s30 }
 0x605   : > { %1451 = vrot.lane.b32.xlu1 %v2646_v38, %s2241_s30 }
 0x606   : > { %1455 = vrot.lane.b32.xlu0 %v1381_v43, %s2241_s30  ;;  %1433 = vrot.lane.b32.xlu2 %v2652_v41, %s2237_s3 }
 0x60d   : > { %1391 = vrot.lane.b32.xlu1 %v2646_v38, %s2239_s18 }
 0x60e   : > { %1435 = vrot.lane.b32.xlu0 %v1381_v43, %s2237_s3  ;;  %1413 = vrot.lane.b32.xlu2 %v2652_v41, %s2228_s10 }
 0x615   : > { %1650 = vrot.lane.b32.xlu1 %v2562_v61, %s2241_s30 }
 0x616   : > { %1415 = vrot.lane.b32.xlu0 %v1381_v43, %s2228_s10  ;;  %1393 = vrot.lane.b32.xlu2 %v2652_v41, %s2239_s18 }
 0x61e   : > { %1395 = vrot.lane.b32.xlu0 %v1381_v43, %s2239_s18  ;;  %1431 = vrot.lane.b32.xlu2 %v2646_v38, %s2237_s3  ;;  %s1869_s3 = smul.u32 24, %s2318_s28 }
 0x620   : > { %s1677_s11 = scalar_lea.hbm %s2778_s7, %s1869_s3 }
 0x621   : > { %s1681_s28 = sshll.u32 %s1677_s11, 4  ;;  %s1682_s28 = int_to_ptr.hbm [resolvable:$true] %s1681_s28 }
 0x622   : > { %s2160_s24 = sshra.s32 %s1682_s28, 4  ;;  %s2161_s24 = int_to_ptr.hbm [resolvable:$true] %s2160_s24 }
 0x623   : > { %s2162_s23 = scalar_lea.hbm %s2161_s24, 24  ;;  %p2167_p2 = scmp.lt.s32.totalorder %s2161_s24, %s2778_s7 }
 0x624   : > { %p2163_p4 = scmp.ne.s32.totalorder %s2161_s24, %s2162_s23  ;;  %p2168_p10 = scmp.lt.s32.totalorder %s2166_s20, %s2162_s23 }
 0x626   : > { %1411 = vrot.lane.b32.xlu0 %v2646_v38, %s2228_s10  ;;  %1576 = vperm.xlu2 %1984, %v1573_v19   ;;  %p2164_p1 = pnand %p2163_p4, %p2373_p7  ;;  %p2169_p13 = por %p2168_p10, %p2167_p2 }
 0x628   : > { %p2165_p11 = pneg %p2164_p1 }
 0x62a   : > { %p2170_p0 = pnand %p2169_p13, %p2165_p11 }
 0x62e   : > { %1648 = vrot.lane.b32.xlu0 %v2554_v60, %s2241_s30  ;;  %1652 = vrot.lane.b32.xlu2 %v2551_v58, %s2241_s30 }
 0x640   : > { %v1534_v44 = vpop.permute.xlu2 %1533 }
 0x647   : > { %v1532_v45 = vpop.permute.xlu1 %1531 }
 0x648   : > { %v1537_v61 = vsel %vm423_vm1, %v1532_v45, %v1534_v44  ;;  %v1516_v46 = vpop.permute.xlu2 %1515 }
 0x649   : > { %1589 = vmatpush.msrb.mxu1 %v1537_v61  ;;  %1524 = vst.msk [vmem:[#allocation4 + $0xb8] sm:$0xff] %vm1082_vm3, %v1516_v46 }
 0x64f   : > { %v1512_v47 = vpop.permute.xlu1 %1511 }
 0x650   : > { %v1474_v48 = vpop.permute.xlu2 %1473  ;;  %v1569_v1 = vld [vmem:[#allocation4 + $0xb8] sm:$0xff] }
 0x657   : > { %v1492_v49 = vpop.permute.xlu1 %1491 }
 0x658   : > { %v1454_v50 = vpop.permute.xlu2 %1453 }
 0x65f   : > { %v1472_v51 = vpop.permute.xlu1 %1471 }
 0x660   : > { %v1477_v52 = vsel %vm1180_vm10, %v1472_v51, %v1474_v48  ;;  %v1536_v53 = vpop.permute.xlu0 %1535  ;;  %v1434_v54 = vpop.permute.xlu2 %1433 }
 0x661   : > { %v1538_v55 = vsel %vm423_vm1, %v1534_v44, %v1536_v53  ;;  %1544 = vst.msk [vmem:[#allocation4 + $0xd0] sm:$0xff] %vm1082_vm3, %v1536_v53 }
 0x662   : > { %1609 = vmatpush.msrb.mxu2 %v1538_v55 }
 0x667   : > { %v1514_v60 = vpop.permute.xlu1 %1513 }
 0x668   : > { %v1517_v56 = vsel %vm1222_vm8, %v1512_v47, %v1514_v60  ;;  %v1518_v57 = vsel %vm1222_vm8, %v1514_v60, %v1516_v46  ;;  %v1494_v59 = vpop.permute.xlu0 %1493  ;;  %v1572_v62 = vld [vmem:[#allocation4 + $0xd0] sm:$0xff]  ;;  %v2702_v63 = vpop.permute.xlu2 %1413 }
 0x669   : > { %1590 = vmatpush.msrb.mxu1 %v1517_v56  ;;  %1610 = vmatpush.msrb.mxu2 %v1518_v57  ;;  %v1497_v0 = vsel %vm1201_vm9, %v1492_v49, %v1494_v59 }
 0x66a   : > { %1629 = vmatpush.msrb.mxu3 %v1572_v62 }
 0x66b   : > { %1591 = vmatpush.msrb.mxu1 %v1497_v0 }
 0x66c   : > { %1630 = vmatpush.msrb.mxu3 %v1569_v1 }
 0x66d   : > { %1592 = vmatpush.msrb.mxu1 %v1477_v52 }
 0x66f   : > { %v1496_v2 = vpop.permute.xlu1 %1495 }
 0x670   : > { %v1498_v3 = vsel %vm1201_vm9, %v1494_v59, %v1496_v2  ;;  %1504 = vst.msk [vmem:[#allocation4 + $0xa0] sm:$0xff] %vm1082_vm3, %v1496_v2  ;;  %v1476_v4 = vpop.permute.xlu0 %1475  ;;  %v1394_v5 = vpop.permute.xlu2 %1393 }
 0x671   : > { %1611 = vmatpush.msrb.mxu2 %v1498_v3  ;;  %v1478_v6 = vsel %vm1180_vm10, %v1474_v48, %v1476_v4  ;;  %1484 = vst.msk [vmem:[#allocation4 + $0x88] sm:$0xff] %vm1082_vm3, %v1476_v4 }
 0x673   : > { %1612 = vmatpush.msrb.mxu2 %v1478_v6 }
 0x677   : > { %v1452_v7 = vpop.permute.xlu1 %1451  ;;  %v1566_v9 = vld [vmem:[#allocation4 + $0xa0] sm:$0xff] }
 0x678   : > { %v1457_v10 = vsel %vm1159_vm11, %v1452_v7, %v1454_v50  ;;  %1631 = vmatpush.msrb.mxu3 %v1566_v9  ;;  %v1456_v12 = vpop.permute.xlu0 %1455  ;;  %v1563_v13 = vld [vmem:[#allocation4 + $0x88] sm:$0xff]  ;;  %v1432_v14 = vpop.permute.xlu2 %1431 }
 0x679   : > { %1593 = vmatpush.msrb.mxu1 %v1457_v10  ;;  %v1458_v15 = vsel %vm1159_vm11, %v1454_v50, %v1456_v12  ;;  %1464 = vst.msk [vmem:[#allocation4 + $0x70] sm:$0xff] %vm1082_vm3, %v1456_v12  ;;  %v1437_v16 = vsel %vm1138_vm12, %v1432_v14, %v1434_v54 }
 0x67a   : > { %1632 = vmatpush.msrb.mxu3 %v1563_v13  ;;  %1613 = vmatpush.msrb.mxu2 %v1458_v15 }
 0x67b   : > { %1594 = vmatpush.msrb.mxu1 %v1437_v16 }
 0x67f   : > { %v1392_v17 = vpop.permute.xlu1 %1391 }
 0x680   : > { %v1397_v18 = vsel %vm1096_vm14, %v1392_v17, %v1394_v5  ;;  %v1436_v20 = vpop.permute.xlu0 %1435  ;;  %v1560_v21 = vld [vmem:[#allocation4 + $0x70] sm:$0xff]  ;;  %v1577_v33 = vpop.permute.xlu2 %1576 }
 0x681   : > { %v1438_v23 = vsel %vm1138_vm12, %v1434_v54, %v1436_v20  ;;  %1444 = vst.msk [vmem:[#allocation4 + $0x58] sm:$0xff] %vm1082_vm3, %v1436_v20  ;;  %1633 = vmatpush.msrb.mxu3 %v1560_v21 }
 0x682   : > { %1614 = vmatpush.msrb.mxu2 %v1438_v23 }
 0x687   : > { %v1651_v11 = vpop.permute.xlu1 %1650 }
 0x688   : > { %v1416_v24 = vpop.permute.xlu0 %1415  ;;  %v1557_v25 = vld [vmem:[#allocation4 + $0x58] sm:$0xff]  ;;  %v1653_v34 = vpop.permute.xlu2 %1652 }
 0x689   : > { %v1418_v26 = vsel %vm1117_vm13, %v2702_v63, %v1416_v24  ;;  %1424 = vst.msk [vmem:[#allocation4 + $0x40] sm:$0xff] %vm1082_vm3, %v1416_v24  ;;  %1634 = vmatpush.msrb.mxu3 %v1557_v25  ;;  %v1655_v36 = vsel %vm1159_vm11, %v1651_v11, %v1653_v34 }
 0x68a   : > { %1615 = vmatpush.msrb.mxu2 %v1418_v26 }
 0x690   : > { %v1396_v27 = vpop.permute.xlu0 %1395  ;;  %v1554_v28 = vld [vmem:[#allocation4 + $0x40] sm:$0xff] }
 0x691   : > { %v1398_v29 = vsel %vm1096_vm14, %v1394_v5, %v1396_v27  ;;  %1404 = vst.msk [vmem:[#allocation4 + $0x28] sm:$0xff] %vm1082_vm3, %v1396_v27  ;;  %1635 = vmatpush.msrb.mxu3 %v1554_v28 }
 0x692   : > { %1616 = vmatpush.msrb.mxu2 %v1398_v29 }
 0x694   : > { %1617 = vmatpush.msrb.mxu2 %v2652_v41 }
 0x695   : > { %1848 = vmatmul.msk.f32.vlgmr.msrb.gmra.mxu2 %vm393_vm0, %v1545_v30 }
 0x698   : > { %v1412_v31 = vpop.permute.xlu0 %1411  ;;  %v1551_v32 = vld [vmem:[#allocation4 + $0x28] sm:$0xff] }
 0x699   : > { %v1417_v58 = vsel %vm1117_vm13, %v1412_v31, %v2702_v63  ;;  %1636 = vmatpush.msrb.mxu3 %v1551_v32 }
 0x69a   : > { %1595 = vmatpush.msrb.mxu1 %v1417_v58 }
 0x69b   : > { %1637 = vmatpush.msrb.mxu3 %v1548_v8 }
 0x69c   : > { %1849 = vmatmul.msk.f32.vlgmr.msrb.gmra.mxu3 %vm393_vm0, %v1545_v30  ;;  %1596 = vmatpush.msrb.mxu1 %v1397_v18 }
 0x69e   : > { %1597 = vmatpush.msrb.mxu1 %v2646_v38 }
 0x69f   : > { %1847 = vmatmul.msk.f32.vlgmr.msrb.gmra.mxu1 %vm393_vm0, %v1545_v30 }
 0x6a0   : > { %v1649_v39 = vpop.permute.xlu0 %1648 }
 0x6a1   : > { %v1654_v42 = vsel %vm1159_vm11, %v1649_v39, %v1651_v11 }
 0x718   : > { %v1619_v35 = vpop.f32.mrf.mxu2 }
 0x719   : > { %v1620_v37 = vadd.f32 %v1619_v35, %v1577_v33 }
 0x71b   : > { %v1660_v40 = vadd.f32 %v1655_v36, %v1620_v37 }
 0x71c   : > { %v1599_v41 = vpop.f32.mrf.mxu1 }
 0x71d   : > { %1663 = vst [vmem:[%s381_s16 + $0x8] sm:$0xff] %v1660_v40  ;;  %v1600_v38 = vadd.f32 %v1599_v41, %v1577_v33 }
 0x71f   : > { %v1639_v43 = vpop.f32.mrf.mxu3  ;;  %v1659_v44 = vadd.f32 %v1654_v42, %v1600_v38 }
 0x720   : > { %v1640_v45 = vadd.f32 %v1639_v43, %v1577_v33 }
 0x721   : > { %1662 = vst [vmem:[%s381_s16] sm:$0xff] %v1659_v44 }
 0x722   : > { %v1661_v61 = vadd.f32 %v1653_v34, %v1640_v45 }
 0x724   : > { %1664 = vst.msk [vmem:[%s381_s16 + $0x10] sm:$0xff] %vm1082_vm3, %v1661_v61 }
 0x725   : > { %2173 = shalt.err (!%p2170_p0)
}
 0x726   : > { %1886 = dma.vmem_to_hbm [thread:$0]  (%p2373_p7), %s1680_s13, 384, %s1682_s28, %s1666_s19  }
 0x727 PF: > { %s2808_s9 = sld [smem:[#allocation20_spill]]  ;;  %p2810_p3 = scmp.ge.s32.totalorder %s2220_s27, 2 }
 0x729   : > { %p1906_p12 = pnand %p2810_p3, %p2332_p6 }
 0x72b   : > { %p1907_p5 = pneg %p1906_p12 }
 0x72d   : > { %s1693_s29 = sand.u32 1, %s2808_s9  }
 0x72e   : > { %s1694_s21 = scalar_lea.sflag [#allocation8], %s1693_s29 }
 0x72f   : > { %2203 = dma.done.wait (%p1907_p5), %s1694_s21, 384  }
 0x730   : > { %2205 = vsyncadd (%p1907_p5), %s1694_s21, 4294966912  ;;  %s2811_s27 = sld [smem:[#allocation22_spill]]  ;;  %s2813_s24 = smov %s2212_s25 }
 0x731   : > { %s2812_s10 = sld [smem:[#allocation23_spill]]  ;;  %s2814_s25 = smov %s2216_s26 }
 0x736   : > { %p22_p8 = scmp.ge.s32.totalorder %s2811_s27, 4  }
 0x737   : > { %s2815_s26 = smov %s2812_s10 }
 0x738   :  { %24 = sbr.rel (!%p22_p8) target bundleno = 10 (0xa), region = 117 }
 0x73d   :  { %1700 = vsyncpa [#allocation7], 1 }
 0x73e   :  { %1702 = vsyncpa [#allocation7 + $0x1], 1 }
 0x73f   :  { %1703 = vsyncpa [#allocation10], 1 }
 0x740   :  { %1705 = vsyncpa [#allocation10 + $0x1], 1 }
 0x741   :  { %1706 = vsyncpa [#allocation13], 1 }
 0x742   :  { %1707 = vsyncpa [#allocation8], 1 }
 0x743   :  { %1709 = vsyncpa [#allocation8 + $0x1], 1 }

</bundles_post_ra>
